<compile_context>
chip_gen: v5e
topology: v5e:2x2
jax: 0.10.0
libtpu: 0.0.40
codegen_flags: <defaults>
</compile_context>

<pallas_src>
import numpy as np
import jax
import jax.numpy as jnp
from jax import lax
from jax.experimental import pallas as pl
from jax.experimental.pallas import tpu as pltpu

EV_A3_TO_GPA = 160.21766208  # same constant as the torch module

# NT contraction (contract last dim of both operands) — same pattern flash
# attention uses; guaranteed to lower on Mosaic.
_NT = (((1,), (1,)), ((), ()))


def _round_up(x, m):
    return ((x + m - 1) // m) * m


def _potential_kernel(
    frac_ref,      # (TN, 3)   f32 fractional coords tile
    feat_ref,      # (TN, F)   bf16 node feature tile
    bidxr_ref,     # (1, TN)   int32 per-node graph id (row), padding rows = B
    bidxc_ref,     # (TN, 1)   int32 per-node graph id (column), padding rows = B
    nref_ref,      # (TN, 1)   f32 element reference energy + data_std*b2
    lat9_ref,      # (B, 9)    f32 per-graph lattice rows (row-major k,d)
    w1_ref,        # (F, H)    bf16
    wp_ref,        # (3, H)    f32
    b1_ref,        # (1, H)    f32
    w2s_ref,       # (H, 1)    f32  data_std * w2
    wpts_ref,      # (3, H)    f32  Wp * (data_std * w2)^T   (transposed dE/dpos weight)
    energy_ref,    # out (B, 1)  — per-core partial, accumulated across node tiles
    forces_ref,    # out (3, TN) — per-tile, lane-dense
    stress_ref,    # out (B, 9)  — per-core partial, accumulated across node tiles
):
    t = pl.program_id(1)   # node-tile index within this core's half ("arbitrary")

    @pl.when(t == 0)
    def _():
        energy_ref[...] = jnp.zeros_like(energy_ref)
        stress_ref[...] = jnp.zeros_like(stress_ref)

    B = lat9_ref.shape[0]
    tn = frac_ref.shape[0]

    # Graph-membership masks from int32 compares; padded rows carry id == B, so
    # their mask rows are all-zero (excluded from latn, energy and stress).
    mask_tb = (lax.broadcasted_iota(jnp.int32, (tn, B), 1)
               == bidxc_ref[...]).astype(jnp.float32)              # (TN, B)
    mask_bt = (lax.broadcasted_iota(jnp.int32, (B, tn), 0)
               == bidxr_ref[...]).astype(jnp.float32)              # (B, TN)

    # Rebuild the per-node lattice rows on the MXU instead of streaming (TN, 9).
    latn = jnp.dot(mask_tb, lat9_ref[...],
                   preferred_element_type=jnp.float32)             # (TN, 9)

    frac = frac_ref[...]
    # pos_i[d] = sum_k frac[i,k] * lattice_{batch(i)}[k,d]   (strain st = 0)
    pos = (frac[:, 0:1] * latn[:, 0:3]
           + frac[:, 1:2] * latn[:, 3:6]
           + frac[:, 2:3] * latn[:, 6:9])                          # (TN, 3) f32

    # forward: u = feat @ W1 (bf16 MXU, f32 acc) + pos @ Wp + b1
    u = jnp.dot(feat_ref[...], w1_ref[...], preferred_element_type=jnp.float32)
    u = u + jnp.dot(pos, wp_ref[...], preferred_element_type=jnp.float32)
    u = u + b1_ref[...]
    h = jnp.tanh(u)                                                # (TN, H)
    g = 1.0 - h * h

    # per-node (data_std-scaled) energy plus element refs (+ folded data_std*b2)
    e_aug = (jnp.dot(h, w2s_ref[...], preferred_element_type=jnp.float32)
             + nref_ref[...])                                      # (TN, 1)

    # d(total)/d(pos) in both orientations (both tiny K=H matmuls):
    #   (3, TN) gives a lane-dense force store; (TN, 3) feeds the stress outer product.
    dedpos_t = lax.dot_general(wpts_ref[...], g, _NT,
                               preferred_element_type=jnp.float32)  # (3, TN)
    dedpos = lax.dot_general(g, wpts_ref[...], _NT,
                             preferred_element_type=jnp.float32)    # (TN, 3)

    # forces = -dE/dpos (data_std folded into wpts); lane-dense store.
    forces_ref[...] = -dedpos_t

    # stress outer product columns: op[i, 3a+c] = pos[i,a] * dedpos[i,c]
    op = jnp.concatenate([pos[:, 0:1] * dedpos,
                          pos[:, 1:2] * dedpos,
                          pos[:, 2:3] * dedpos], axis=1)           # (TN, 9)

    # Segment sums as standard MXU matmuls, accumulated directly in the resident
    # per-core output blocks (block index constant along the "arbitrary" axis).
    energy_ref[...] += jnp.dot(mask_bt, e_aug, preferred_element_type=jnp.float32)
    stress_ref[...] += jnp.dot(mask_bt, op, preferred_element_type=jnp.float32)


def potential_forward(lat, frac, feat, batch_idx, node_z, params, *,
                      tile_n=4096, core_split=2):
    """Pallas implementation of Potential.forward for the surrogate model.

    Returns (total_energies (B,), forces (N,3), stresses (3B,3), hessian (1,)).
    """
    B = lat.shape[0]
    N, F = feat.shape
    H = params["W1"].shape[1]

    # ---- node tiling: large tiles (multiple of 128) to amortise per-step grid
    #      overhead; shrink for tiny inputs.  At tile_n=4096, F=32 the double-
    #      buffered streams are well under 1 MiB — far below even v5e's 16 MiB
    #      scoped-VMEM default, so no vmem_limit_bytes override is needed.
    tile_n = _round_up(min(tile_n, _round_up(max(N, 1), 128)), 128)
    tiles_total = -(-N // tile_n)
    core_split = max(1, min(core_split, tiles_total))   # v7x: 2 TCs; v5e/v6e: loop
    tpc = -(-tiles_total // core_split)                 # node tiles per core
    n_pad = core_split * tpc * tile_n

    def pad_rows(x):
        return jnp.pad(x, ((0, n_pad - N), (0, 0)))

    # ---- host-side glue (gathers, weight folding, padding) ----
    data_std = jnp.asarray(params["data_std"], jnp.float32)
    b2_s = data_std * jnp.asarray(params["b2"], jnp.float32)

    frac_p = pad_rows(frac.astype(jnp.float32))
    feat_p = pad_rows(feat.astype(jnp.float32)).astype(jnp.bfloat16)
    nref_p = pad_rows(params["element_refs"][node_z].reshape(N, 1).astype(jnp.float32)
                      + b2_s)
    bidx_pad = jnp.pad(batch_idx.astype(jnp.int32), (0, n_pad - N),
                       constant_values=B)
    bidx_row = bidx_pad.reshape(1, n_pad)
    bidx_col = bidx_pad.reshape(n_pad, 1)

    lat9 = lat.reshape(B, 9).astype(jnp.float32)
    w1_bf = params["W1"].astype(jnp.bfloat16)                      # (F, H)
    wp = params["Wp"].astype(jnp.float32)                          # (3, H)
    b1 = params["b1"].astype(jnp.float32)                          # (1, H)
    w2s = (data_std * params["w2"]).astype(jnp.float32)            # (H, 1)
    wpts_t = (params["Wp"].astype(jnp.float32) * w2s[:, 0][None, :])  # (3, H)

    row_map = lambda c, t: (c * tpc + t, 0)

    grid_spec = pltpu.PrefetchScalarGridSpec(
        num_scalar_prefetch=0,
        grid=(core_split, tpc),
        in_specs=[
            pl.BlockSpec((tile_n, 3), row_map),                    # frac
            pl.BlockSpec((tile_n, F), row_map),                    # feat (bf16)
            pl.BlockSpec((1, tile_n), lambda c, t: (0, c * tpc + t)),  # graph id row
            pl.BlockSpec((tile_n, 1), row_map),                    # graph id column
            pl.BlockSpec((tile_n, 1), row_map),                    # element refs (+b2)
            pl.BlockSpec((B, 9), lambda c, t: (0, 0)),             # per-graph lattice
            pl.BlockSpec((F, H), lambda c, t: (0, 0)),             # W1 (bf16)
            pl.BlockSpec((3, H), lambda c, t: (0, 0)),             # Wp
            pl.BlockSpec((1, H), lambda c, t: (0, 0)),             # b1
            pl.BlockSpec((H, 1), lambda c, t: (0, 0)),             # data_std * w2
            pl.BlockSpec((3, H), lambda c, t: (0, 0)),             # Wp * (data_std*w2)^T
        ],
        out_specs=[
            pl.BlockSpec((None, B, 1), lambda c, t: (c, 0, 0)),    # energy partials
            pl.BlockSpec((3, tile_n), lambda c, t: (0, c * tpc + t)),  # forces (lane-dense)
            pl.BlockSpec((None, B, 9), lambda c, t: (c, 0, 0)),    # stress partials
        ],
    )

    energy_parts, forces_t, stress_parts = pl.pallas_call(
        _potential_kernel,
        out_shape=(
            jax.ShapeDtypeStruct((core_split, B, 1), jnp.float32),
            jax.ShapeDtypeStruct((3, n_pad), jnp.float32),
            jax.ShapeDtypeStruct((core_split, B, 9), jnp.float32),
        ),
        grid_spec=grid_spec,
        compiler_params=pltpu.CompilerParams(
            # core axis parallel (v7x megacore); node axis accumulates → arbitrary
            dimension_semantics=("parallel", "arbitrary")),
    )(frac_p, feat_p, bidx_row, bidx_col, nref_p,
      lat9, w1_bf, wp, b1, w2s, wpts_t)

    # ---- tiny cross-core reduction + scaling in the wrapper (jit-safe) ----
    data_mean = jnp.asarray(params["data_mean"], jnp.float32)
    energies = energy_parts.sum(axis=0)[:, 0] + data_mean          # (B,)

    vol = jnp.abs(jnp.linalg.det(lat))
    stress9 = stress_parts.sum(axis=0) * (EV_A3_TO_GPA / vol)[:, None].astype(jnp.float32)
    stresses = stress9.reshape(3 * B, 3)                           # torch.cat layout

    # Padded node rows (N..n_pad) carry garbage force values (tanh(b1) path);
    # they are excluded from energy/stress by the mask and sliced off here.
    forces = forces_t[:, :N].T                                     # (N, 3)

    hessian = jnp.zeros(1, jnp.float32)                            # calc_hessian=False
    return energies, forces, stresses, hessian


def _reference_forward(lat, frac, feat, batch_idx, node_z, params):
    """Pure-JAX reference using jax.grad (mirrors torch autograd semantics)."""
    B = lat.shape[0]
    member_bn = (batch_idx[None, :] == jnp.arange(B)[:, None]).astype(jnp.float32)

    def model_energy(pos):                       # (N,3) -> (B,)
        u = feat @ params["W1"] + pos @ params["Wp"] + params["b1"]
        h = jnp.tanh(u)
        e = (h @ params["w2"])[:, 0] + params["b2"]
        return params["data_std"] * (member_bn @ e) + params["data_mean"]

    def pos_from_st(st):
        lattice = lat @ (jnp.eye(3) + st)        # (B,3,3)
        latn = lattice[batch_idx]                # (N,3,3)
        return jnp.einsum("nk,nkd->nd", frac, latn)

    st0 = jnp.zeros((B, 3, 3))
    pos0 = pos_from_st(st0)
    total = model_energy(pos0) + member_bn @ params["element_refs"][node_z]

    g_pos = jax.grad(lambda p: jnp.sum(model_energy(p)))(pos0)
    g_st = jax.grad(lambda s: jnp.sum(model_energy(pos_from_st(s))))(st0)

    forces = -g_pos
    vol = jnp.abs(jnp.linalg.det(lat))
    stresses = (g_st * (EV_A3_TO_GPA / vol)[:, None, None]).reshape(3 * B, 3)
    return total, forces, stresses


if __name__ == "__main__":
    key = jax.random.PRNGKey(0)
    ks = jax.random.split(key, 8)

    B = 2                     # graphs in the batch
    nodes_per_graph = (7, 9)  # ragged graph sizes
    N = sum(nodes_per_graph)  # 16 atoms total
    F = 32                    # node feature dim
    H = 32                    # surrogate hidden dim
    NUM_ELEM = 4

    lat = jnp.eye(3)[None, :, :] * 3.0 + 0.1 * jax.random.normal(ks[0], (B, 3, 3))
    frac = jax.random.uniform(ks[1], (N, 3), dtype=jnp.float32)
    # feat / W1 stream through the kernel in bf16; make the test inputs
    # bf16-exact so the f32 reference and the bf16-MXU kernel agree tightly.
    feat = (0.5 * jax.random.normal(ks[2], (N, F), dtype=jnp.float32)
            ).astype(jnp.bfloat16).astype(jnp.float32)
    node_z = jax.random.randint(ks[3], (N,), 0, NUM_ELEM)
    batch_idx = jnp.repeat(jnp.arange(B), jnp.array(nodes_per_graph))

    params = {
        "W1": (jax.random.normal(ks[4], (F, H), dtype=jnp.float32) / jnp.sqrt(F)
               ).astype(jnp.bfloat16).astype(jnp.float32),
        "Wp": jax.random.normal(ks[5], (3, H), dtype=jnp.float32) / jnp.sqrt(3.0),
        "b1": 0.1 * jax.random.normal(ks[6], (1, H), dtype=jnp.float32),
        "w2": jax.random.normal(ks[7], (H, 1), dtype=jnp.float32) / jnp.sqrt(H),
        "b2": 0.05,
        "element_refs": jnp.array([-1.0, -2.0, -0.5, -3.0], jnp.float32),
        "data_mean": 0.1,
        "data_std": 2.0,
    }

    energies, forces, stresses, hessian = potential_forward(
        lat, frac, feat, batch_idx, node_z, params)
    jax.block_until_ready((energies, forces, stresses, hessian))

    e_ref, f_ref, s_ref = _reference_forward(lat, frac, feat, batch_idx, node_z, params)
    assert np.allclose(np.asarray(energies), np.asarray(e_ref), atol=1e-3, rtol=1e-3)
    assert np.allclose(np.asarray(forces), np.asarray(f_ref), atol=1e-3, rtol=1e-3)
    assert np.allclose(np.asarray(stresses), np.asarray(s_ref), atol=1e-3, rtol=1e-3)
    assert energies.shape == (B,) and forces.shape == (N, 3)
    assert stresses.shape == (3 * B, 3) and hessian.shape == (1,)

    print("KERNEL_OK")
</pallas_src>

<mosaic_0001>
module attributes {stable_mosaic.version = 11 : i64} {
  func.func @_potential_kernel(%arg0: i32, %arg1: i32, %arg2: memref<128x3xf32, #tpu.memory_space<vmem>>, %arg3: memref<128x32xbf16, #tpu.memory_space<vmem>>, %arg4: memref<1x128xi32, #tpu.memory_space<vmem>>, %arg5: memref<128x1xi32, #tpu.memory_space<vmem>>, %arg6: memref<128x1xf32, #tpu.memory_space<vmem>>, %arg7: memref<2x9xf32, #tpu.memory_space<vmem>>, %arg8: memref<32x32xbf16, #tpu.memory_space<vmem>>, %arg9: memref<3x32xf32, #tpu.memory_space<vmem>>, %arg10: memref<1x32xf32, #tpu.memory_space<vmem>>, %arg11: memref<32x1xf32, #tpu.memory_space<vmem>>, %arg12: memref<3x32xf32, #tpu.memory_space<vmem>>, %arg13: memref<1x2x1xf32, #tpu.memory_space<vmem>>, %arg14: memref<3x128xf32, #tpu.memory_space<vmem>>, %arg15: memref<1x2x9xf32, #tpu.memory_space<vmem>>) attributes {dimension_semantics = [#tpu.dimension_semantics<parallel>, #tpu.dimension_semantics<arbitrary>], iteration_bounds = array<i64: 1, 1>, scalar_prefetch = 0 : i64, scratch_operands = 0 : i64, tpu.core_type = #tpu.core_type<tc>, window_params = [{transform_indices = @transform_0, window_bounds = array<i64: 128, 3>}, {transform_indices = @transform_1, window_bounds = array<i64: 128, 32>}, {transform_indices = @transform_2, window_bounds = array<i64: 1, 128>}, {transform_indices = @transform_3, window_bounds = array<i64: 128, 1>}, {transform_indices = @transform_4, window_bounds = array<i64: 128, 1>}, {pipeline_mode = #tpu.pipeline_mode<synchronous>, transform_indices = @transform_5, window_bounds = array<i64: 2, 9>}, {pipeline_mode = #tpu.pipeline_mode<synchronous>, transform_indices = @transform_6, window_bounds = array<i64: 32, 32>}, {pipeline_mode = #tpu.pipeline_mode<synchronous>, transform_indices = @transform_7, window_bounds = array<i64: 3, 32>}, {pipeline_mode = #tpu.pipeline_mode<synchronous>, transform_indices = @transform_8, window_bounds = array<i64: 1, 32>}, {pipeline_mode = #tpu.pipeline_mode<synchronous>, transform_indices = @transform_9, window_bounds = array<i64: 32, 1>}, {pipeline_mode = #tpu.pipeline_mode<synchronous>, transform_indices = @transform_10, window_bounds = array<i64: 3, 32>}, {transform_indices = @transform_11, window_bounds = array<i64: 1, 2, 1>}, {transform_indices = @transform_12, window_bounds = array<i64: 3, 128>}, {transform_indices = @transform_13, window_bounds = array<i64: 1, 2, 9>}]} {
    %c0_i32 = arith.constant 0 : i32
    %0 = arith.cmpi eq, %arg1, %c0_i32 : i32
    %1 = arith.extui %0 : i1 to i32
    %c0_i32_0 = arith.constant 0 : i32
    %2 = arith.cmpi ne, %1, %c0_i32_0 : i32
    scf.if %2 {
      %cst_47 = arith.constant 0.000000e+00 : f32
      %80 = vector.broadcast %cst_47 : f32 to vector<2x1xf32>
      %c0_48 = arith.constant 0 : index
      %c0_49 = arith.constant 0 : index
      %c0_50 = arith.constant 0 : index
      %81 = vector.load %arg13[%c0_48, %c0_49, %c0_50] : memref<1x2x1xf32, #tpu.memory_space<vmem>>, vector<1x2x1xf32>
      %82 = vector.shape_cast %81 : vector<1x2x1xf32> to vector<2x1xf32>
      %83 = vector.shape_cast %80 : vector<2x1xf32> to vector<1x2x1xf32>
      tpu.vector_store %arg13[%c0_48, %c0_49, %c0_50], %83 {strides = array<i32>} : memref<1x2x1xf32, #tpu.memory_space<vmem>>, vector<1x2x1xf32>,
      %cst_51 = arith.constant 0.000000e+00 : f32
      %84 = vector.broadcast %cst_51 : f32 to vector<2x9xf32>
      %c0_52 = arith.constant 0 : index
      %c0_53 = arith.constant 0 : index
      %c0_54 = arith.constant 0 : index
      %85 = vector.load %arg15[%c0_52, %c0_53, %c0_54] : memref<1x2x9xf32, #tpu.memory_space<vmem>>, vector<1x2x9xf32>
      %86 = vector.shape_cast %85 : vector<1x2x9xf32> to vector<2x9xf32>
      %87 = vector.shape_cast %84 : vector<2x9xf32> to vector<1x2x9xf32>
      tpu.vector_store %arg15[%c0_52, %c0_53, %c0_54], %87 {strides = array<i32>} : memref<1x2x9xf32, #tpu.memory_space<vmem>>, vector<1x2x9xf32>,
    } else {
    }
    %3 = tpu.iota {dimensions = array<i32: 1>} : vector<128x2xi32>
    %c0 = arith.constant 0 : index
    %c0_1 = arith.constant 0 : index
    %4 = vector.load %arg5[%c0, %c0_1] : memref<128x1xi32, #tpu.memory_space<vmem>>, vector<128x1xi32>
    %5 = vector.broadcast %4 : vector<128x1xi32> to vector<128x2xi32>
    %6 = arith.cmpi eq, %3, %5 : vector<128x2xi32>
    %7 = arith.extui %6 : vector<128x2xi1> to vector<128x2xi32>
    %8 = arith.sitofp %7 : vector<128x2xi32> to vector<128x2xf32>
    %9 = tpu.iota {dimensions = array<i32: 0>} : vector<2x128xi32>
    %c0_2 = arith.constant 0 : index
    %c0_3 = arith.constant 0 : index
    %10 = vector.load %arg4[%c0_2, %c0_3] : memref<1x128xi32, #tpu.memory_space<vmem>>, vector<1x128xi32>
    %11 = vector.broadcast %10 : vector<1x128xi32> to vector<2x128xi32>
    %12 = arith.cmpi eq, %9, %11 : vector<2x128xi32>
    %13 = arith.extui %12 : vector<2x128xi1> to vector<2x128xi32>
    %14 = arith.sitofp %13 : vector<2x128xi32> to vector<2x128xf32>
    %c0_4 = arith.constant 0 : index
    %c0_5 = arith.constant 0 : index
    %15 = vector.load %arg7[%c0_4, %c0_5] : memref<2x9xf32, #tpu.memory_space<vmem>>, vector<2x9xf32>
    %cst = arith.constant dense<0.000000e+00> : vector<128x9xf32>
    %16 = tpu.matmul %8, %15, %cst {dimension_numbers = #tpu.dot_dimension_numbers<[1], [0], [0], [1], [0, 0, 1, 1], [], []>} : vector<128x2xf32>, vector<2x9xf32>, vector<128x9xf32> -> vector<128x9xf32>
    %c0_6 = arith.constant 0 : index
    %c0_7 = arith.constant 0 : index
    %17 = vector.load %arg2[%c0_6, %c0_7] : memref<128x3xf32, #tpu.memory_space<vmem>>, vector<128x3xf32>
    %18 = vector.extract_strided_slice %17 {offsets = [0, 0], sizes = [128, 1], strides = [1, 1]} : vector<128x3xf32> to vector<128x1xf32>
    %19 = vector.extract_strided_slice %16 {offsets = [0, 0], sizes = [128, 3], strides = [1, 1]} : vector<128x9xf32> to vector<128x3xf32>
    %20 = vector.broadcast %18 : vector<128x1xf32> to vector<128x3xf32>
    %21 = arith.mulf %20, %19 : vector<128x3xf32>
    %22 = vector.extract_strided_slice %17 {offsets = [0, 1], sizes = [128, 1], strides = [1, 1]} : vector<128x3xf32> to vector<128x1xf32>
    %23 = vector.extract_strided_slice %16 {offsets = [0, 3], sizes = [128, 3], strides = [1, 1]} : vector<128x9xf32> to vector<128x3xf32>
    %24 = vector.broadcast %22 : vector<128x1xf32> to vector<128x3xf32>
    %25 = arith.mulf %24, %23 : vector<128x3xf32>
    %26 = arith.addf %21, %25 : vector<128x3xf32>
    %27 = vector.extract_strided_slice %17 {offsets = [0, 2], sizes = [128, 1], strides = [1, 1]} : vector<128x3xf32> to vector<128x1xf32>
    %28 = vector.extract_strided_slice %16 {offsets = [0, 6], sizes = [128, 3], strides = [1, 1]} : vector<128x9xf32> to vector<128x3xf32>
    %29 = vector.broadcast %27 : vector<128x1xf32> to vector<128x3xf32>
    %30 = arith.mulf %29, %28 : vector<128x3xf32>
    %31 = arith.addf %26, %30 : vector<128x3xf32>
    %c0_8 = arith.constant 0 : index
    %c0_9 = arith.constant 0 : index
    %32 = vector.load %arg3[%c0_8, %c0_9] : memref<128x32xbf16, #tpu.memory_space<vmem>>, vector<128x32xbf16>
    %c0_10 = arith.constant 0 : index
    %c0_11 = arith.constant 0 : index
    %33 = vector.load %arg8[%c0_10, %c0_11] : memref<32x32xbf16, #tpu.memory_space<vmem>>, vector<32x32xbf16>
    %cst_12 = arith.constant dense<0.000000e+00> : vector<128x32xf32>
    %34 = tpu.matmul %32, %33, %cst_12 {dimension_numbers = #tpu.dot_dimension_numbers<[1], [0], [0], [1], [0, 0, 1, 1], [], []>} : vector<128x32xbf16>, vector<32x32xbf16>, vector<128x32xf32> -> vector<128x32xf32>
    %c0_13 = arith.constant 0 : index
    %c0_14 = arith.constant 0 : index
    %35 = vector.load %arg9[%c0_13, %c0_14] : memref<3x32xf32, #tpu.memory_space<vmem>>, vector<3x32xf32>
    %cst_15 = arith.constant dense<0.000000e+00> : vector<128x32xf32>
    %36 = tpu.matmul %31, %35, %cst_15 {dimension_numbers = #tpu.dot_dimension_numbers<[1], [0], [0], [1], [0, 0, 1, 1], [], []>} : vector<128x3xf32>, vector<3x32xf32>, vector<128x32xf32> -> vector<128x32xf32>
    %37 = arith.addf %34, %36 : vector<128x32xf32>
    %c0_16 = arith.constant 0 : index
    %c0_17 = arith.constant 0 : index
    %38 = vector.load %arg10[%c0_16, %c0_17] : memref<1x32xf32, #tpu.memory_space<vmem>>, vector<1x32xf32>
    %39 = vector.broadcast %38 : vector<1x32xf32> to vector<128x32xf32>
    %40 = arith.addf %37, %39 : vector<128x32xf32>
    %41 = math.tanh %40 : vector<128x32xf32>
    %42 = arith.mulf %41, %41 : vector<128x32xf32>
    %cst_18 = arith.constant 1.000000e+00 : f32
    %43 = vector.broadcast %cst_18 : f32 to vector<128x32xf32>
    %44 = arith.subf %43, %42 : vector<128x32xf32>
    %c0_19 = arith.constant 0 : index
    %c0_20 = arith.constant 0 : index
    %45 = vector.load %arg11[%c0_19, %c0_20] : memref<32x1xf32, #tpu.memory_space<vmem>>, vector<32x1xf32>
    %cst_21 = arith.constant dense<0.000000e+00> : vector<128x1xf32>
    %46 = tpu.matmul %41, %45, %cst_21 {dimension_numbers = #tpu.dot_dimension_numbers<[1], [0], [0], [1], [0, 0, 1, 1], [], []>} : vector<128x32xf32>, vector<32x1xf32>, vector<128x1xf32> -> vector<128x1xf32>
    %c0_22 = arith.constant 0 : index
    %c0_23 = arith.constant 0 : index
    %47 = vector.load %arg6[%c0_22, %c0_23] : memref<128x1xf32, #tpu.memory_space<vmem>>, vector<128x1xf32>
    %48 = arith.addf %46, %47 : vector<128x1xf32>
    %c0_24 = arith.constant 0 : index
    %c0_25 = arith.constant 0 : index
    %49 = vector.load %arg12[%c0_24, %c0_25] : memref<3x32xf32, #tpu.memory_space<vmem>>, vector<3x32xf32>
    %cst_26 = arith.constant dense<0.000000e+00> : vector<3x128xf32>
    %50 = tpu.matmul %49, %44, %cst_26 {dimension_numbers = #tpu.dot_dimension_numbers<[1], [1], [0], [0], [0, 0, 1, 0], [], []>} : vector<3x32xf32>, vector<128x32xf32>, vector<3x128xf32> -> vector<3x128xf32>
    %c0_27 = arith.constant 0 : index
    %c0_28 = arith.constant 0 : index
    %51 = vector.load %arg12[%c0_27, %c0_28] : memref<3x32xf32, #tpu.memory_space<vmem>>, vector<3x32xf32>
    %cst_29 = arith.constant dense<0.000000e+00> : vector<128x3xf32>
    %52 = tpu.matmul %44, %51, %cst_29 {dimension_numbers = #tpu.dot_dimension_numbers<[1], [1], [0], [0], [0, 0, 1, 0], [], []>} : vector<128x32xf32>, vector<3x32xf32>, vector<128x3xf32> -> vector<128x3xf32>
    %cst_30 = arith.constant 0.000000e+00 : f32
    %53 = vector.broadcast %cst_30 : f32 to vector<3x128xf32>
    %54 = arith.subf %53, %50 : vector<3x128xf32>
    %c0_31 = arith.constant 0 : index
    %c0_32 = arith.constant 0 : index
    %55 = vector.load %arg14[%c0_31, %c0_32] : memref<3x128xf32, #tpu.memory_space<vmem>>, vector<3x128xf32>
    tpu.vector_store %arg14[%c0_31, %c0_32], %54 {strides = array<i32>} : memref<3x128xf32, #tpu.memory_space<vmem>>, vector<3x128xf32>,
    %56 = vector.extract_strided_slice %31 {offsets = [0, 0], sizes = [128, 1], strides = [1, 1]} : vector<128x3xf32> to vector<128x1xf32>
    %57 = vector.broadcast %56 : vector<128x1xf32> to vector<128x3xf32>
    %58 = arith.mulf %57, %52 : vector<128x3xf32>
    %59 = vector.extract_strided_slice %31 {offsets = [0, 1], sizes = [128, 1], strides = [1, 1]} : vector<128x3xf32> to vector<128x1xf32>
    %60 = vector.broadcast %59 : vector<128x1xf32> to vector<128x3xf32>
    %61 = arith.mulf %60, %52 : vector<128x3xf32>
    %62 = vector.extract_strided_slice %31 {offsets = [0, 2], sizes = [128, 1], strides = [1, 1]} : vector<128x3xf32> to vector<128x1xf32>
    %63 = vector.broadcast %62 : vector<128x1xf32> to vector<128x3xf32>
    %64 = arith.mulf %63, %52 : vector<128x3xf32>
    %65 = tpu.concatenate %58, %61, %64 in 1 : vector<128x3xf32>, vector<128x3xf32>, vector<128x3xf32> -> vector<128x9xf32>
    %c0_33 = arith.constant 0 : index
    %c0_34 = arith.constant 0 : index
    %c0_35 = arith.constant 0 : index
    %66 = vector.load %arg13[%c0_33, %c0_34, %c0_35] : memref<1x2x1xf32, #tpu.memory_space<vmem>>, vector<1x2x1xf32>
    %67 = vector.shape_cast %66 : vector<1x2x1xf32> to vector<2x1xf32>
    %cst_36 = arith.constant dense<0.000000e+00> : vector<2x1xf32>
    %68 = tpu.matmul %14, %48, %cst_36 {dimension_numbers = #tpu.dot_dimension_numbers<[1], [0], [0], [1], [0, 0, 1, 1], [], []>} : vector<2x128xf32>, vector<128x1xf32>, vector<2x1xf32> -> vector<2x1xf32>
    %69 = arith.addf %67, %68 : vector<2x1xf32>
    %c0_37 = arith.constant 0 : index
    %c0_38 = arith.constant 0 : index
    %c0_39 = arith.constant 0 : index
    %70 = vector.load %arg13[%c0_37, %c0_38, %c0_39] : memref<1x2x1xf32, #tpu.memory_space<vmem>>, vector<1x2x1xf32>
    %71 = vector.shape_cast %70 : vector<1x2x1xf32> to vector<2x1xf32>
    %72 = vector.shape_cast %69 : vector<2x1xf32> to vector<1x2x1xf32>
    tpu.vector_store %arg13[%c0_37, %c0_38, %c0_39], %72 {strides = array<i32>} : memref<1x2x1xf32, #tpu.memory_space<vmem>>, vector<1x2x1xf32>,
    %c0_40 = arith.constant 0 : index
    %c0_41 = arith.constant 0 : index
    %c0_42 = arith.constant 0 : index
    %73 = vector.load %arg15[%c0_40, %c0_41, %c0_42] : memref<1x2x9xf32, #tpu.memory_space<vmem>>, vector<1x2x9xf32>
    %74 = vector.shape_cast %73 : vector<1x2x9xf32> to vector<2x9xf32>
    %cst_43 = arith.constant dense<0.000000e+00> : vector<2x9xf32>
    %75 = tpu.matmul %14, %65, %cst_43 {dimension_numbers = #tpu.dot_dimension_numbers<[1], [0], [0], [1], [0, 0, 1, 1], [], []>} : vector<2x128xf32>, vector<128x9xf32>, vector<2x9xf32> -> vector<2x9xf32>
    %76 = arith.addf %74, %75 : vector<2x9xf32>
    %c0_44 = arith.constant 0 : index
    %c0_45 = arith.constant 0 : index
    %c0_46 = arith.constant 0 : index
    %77 = vector.load %arg15[%c0_44, %c0_45, %c0_46] : memref<1x2x9xf32, #tpu.memory_space<vmem>>, vector<1x2x9xf32>
    %78 = vector.shape_cast %77 : vector<1x2x9xf32> to vector<2x9xf32>
    %79 = vector.shape_cast %76 : vector<2x9xf32> to vector<1x2x9xf32>
    tpu.vector_store %arg15[%c0_44, %c0_45, %c0_46], %79 {strides = array<i32>} : memref<1x2x9xf32, #tpu.memory_space<vmem>>, vector<1x2x9xf32>,
    return
  }
  func.func @transform_0(%arg0: i32, %arg1: i32) -> (i32, i32) {
    %c1_i32 = arith.constant 1 : i32
    %0 = arith.muli %arg0, %c1_i32 : i32
    %1 = arith.addi %0, %arg1 : i32
    %c0_i32 = arith.constant 0 : i32
    %c0_i32_0 = arith.constant 0 : i32
    return %1, %c0_i32 : i32, i32
  }
  func.func @transform_1(%arg0: i32, %arg1: i32) -> (i32, i32) {
    %c1_i32 = arith.constant 1 : i32
    %0 = arith.muli %arg0, %c1_i32 : i32
    %1 = arith.addi %0, %arg1 : i32
    %c0_i32 = arith.constant 0 : i32
    %c0_i32_0 = arith.constant 0 : i32
    return %1, %c0_i32 : i32, i32
  }
  func.func @transform_2(%arg0: i32, %arg1: i32) -> (i32, i32) {
    %c1_i32 = arith.constant 1 : i32
    %0 = arith.muli %arg0, %c1_i32 : i32
    %1 = arith.addi %0, %arg1 : i32
    %c0_i32 = arith.constant 0 : i32
    %c0_i32_0 = arith.constant 0 : i32
    return %c0_i32, %1 : i32, i32
  }
  func.func @transform_3(%arg0: i32, %arg1: i32) -> (i32, i32) {
    %c1_i32 = arith.constant 1 : i32
    %0 = arith.muli %arg0, %c1_i32 : i32
    %1 = arith.addi %0, %arg1 : i32
    %c0_i32 = arith.constant 0 : i32
    %c0_i32_0 = arith.constant 0 : i32
    return %1, %c0_i32 : i32, i32
  }
  func.func @transform_4(%arg0: i32, %arg1: i32) -> (i32, i32) {
    %c1_i32 = arith.constant 1 : i32
    %0 = arith.muli %arg0, %c1_i32 : i32
    %1 = arith.addi %0, %arg1 : i32
    %c0_i32 = arith.constant 0 : i32
    %c0_i32_0 = arith.constant 0 : i32
    return %1, %c0_i32 : i32, i32
  }
  func.func @transform_5(%arg0: i32, %arg1: i32) -> (i32, i32) {
    %c0_i32 = arith.constant 0 : i32
    %c0_i32_0 = arith.constant 0 : i32
    %c0_i32_1 = arith.constant 0 : i32
    return %c0_i32, %c0_i32_0 : i32, i32
  }
  func.func @transform_6(%arg0: i32, %arg1: i32) -> (i32, i32) {
    %c0_i32 = arith.constant 0 : i32
    %c0_i32_0 = arith.constant 0 : i32
    %c0_i32_1 = arith.constant 0 : i32
    return %c0_i32, %c0_i32_0 : i32, i32
  }
  func.func @transform_7(%arg0: i32, %arg1: i32) -> (i32, i32) {
    %c0_i32 = arith.constant 0 : i32
    %c0_i32_0 = arith.constant 0 : i32
    %c0_i32_1 = arith.constant 0 : i32
    return %c0_i32, %c0_i32_0 : i32, i32
  }
  func.func @transform_8(%arg0: i32, %arg1: i32) -> (i32, i32) {
    %c0_i32 = arith.constant 0 : i32
    %c0_i32_0 = arith.constant 0 : i32
    %c0_i32_1 = arith.constant 0 : i32
    return %c0_i32, %c0_i32_0 : i32, i32
  }
  func.func @transform_9(%arg0: i32, %arg1: i32) -> (i32, i32) {
    %c0_i32 = arith.constant 0 : i32
    %c0_i32_0 = arith.constant 0 : i32
    %c0_i32_1 = arith.constant 0 : i32
    return %c0_i32, %c0_i32_0 : i32, i32
  }
  func.func @transform_10(%arg0: i32, %arg1: i32) -> (i32, i32) {
    %c0_i32 = arith.constant 0 : i32
    %c0_i32_0 = arith.constant 0 : i32
    %c0_i32_1 = arith.constant 0 : i32
    return %c0_i32, %c0_i32_0 : i32, i32
  }
  func.func @transform_11(%arg0: i32, %arg1: i32) -> (i32, i32, i32) {
    %c0_i32 = arith.constant 0 : i32
    %c0_i32_0 = arith.constant 0 : i32
    %c0_i32_1 = arith.constant 0 : i32
    return %arg0, %c0_i32, %c0_i32_0 : i32, i32, i32
  }
  func.func @transform_12(%arg0: i32, %arg1: i32) -> (i32, i32) {
    %c1_i32 = arith.constant 1 : i32
    %0 = arith.muli %arg0, %c1_i32 : i32
    %1 = arith.addi %0, %arg1 : i32
    %c0_i32 = arith.constant 0 : i32
    %c0_i32_0 = arith.constant 0 : i32
    return %c0_i32, %1 : i32, i32
  }
  func.func @transform_13(%arg0: i32, %arg1: i32) -> (i32, i32, i32) {
    %c0_i32 = arith.constant 0 : i32
    %c0_i32_0 = arith.constant 0 : i32
    %c0_i32_1 = arith.constant 0 : i32
    return %arg0, %c0_i32, %c0_i32_0 : i32, i32, i32
  }
}

</mosaic_0001>

<bundles_post_ra>
// kernel: tpu_custom_call.1
= control target key start
LH: loop header
LB: loop body
LE: loop exit
PB: predicated region body
PF: predicated region fallthrough
CT: control target
= control target key end

     0   :  { %19 = vsyncpa [#allocation3], 0  ;;  %v2346_v3 = vmov 0   ;;  %s3524_s0 = inlined_call_operand.vmem [shape: f32[128,3], index: 0, kind: input, shape index: {}]   ;;  %s3525_s1 = inlined_call_operand.vmem [shape: bf16[128,32], index: 1, kind: input, shape index: {}]   ;;  %s3526_s2 = inlined_call_operand.vmem [shape: s32[1,128], index: 2, kind: input, shape index: {}]   ;;  %s3527_s3 = inlined_call_operand.vmem [shape: s32[128,1], index: 3, kind: input, shape index: {}]   ;;  %s3528_s4 = inlined_call_operand.vmem [shape: f32[128,1], index: 4, kind: input, shape index: {}]   ;;  %s3529_s5 = inlined_call_operand.vmem [shape: f32[2,9], index: 5, kind: input, shape index: {}]   ;;  %s3530_s6 = inlined_call_operand.vmem [shape: bf16[32,32], index: 6, kind: input, shape index: {}]   ;;  %s3531_s7 = inlined_call_operand.vmem [shape: f32[3,32], index: 7, kind: input, shape index: {}]   ;;  %s3532_s8 = inlined_call_operand.vmem [shape: f32[1,32], index: 8, kind: input, shape index: {}]   ;;  %s3533_s9 = inlined_call_operand.vmem [shape: f32[32,1], index: 9, kind: input, shape index: {}]   ;;  %s3534_s10 = inlined_call_operand.vmem [shape: f32[3,32], index: 10, kind: input, shape index: {}]   ;;  %s3535_s11 = inlined_call_operand.vmem [shape: f32[1,2,1], index: 11, kind: output, shape index: {0}]   ;;  %s3536_s12 = inlined_call_operand.hbm [shape: f32[3,128], index: 12, kind: output, shape index: {1}]   ;;  %s3537_s13 = inlined_call_operand.hbm [shape: f32[1,2,9], index: 13, kind: output, shape index: {2}]  }
   0x1   :  { %v161_v0 = vld [vmem:[%s3527_s3 + $0x20] sm:$0xff]  ;;  %v159_v1 = vld [vmem:[%s3527_s3 + $0x10] sm:$0xff]  ;;  %2125 = vset.pattern.permute.xlu2 %v2346_v3  ;;  %2124 = vset.pattern.permute.xlu1 %v2346_v3 }
   0x2   :  { %v157_v2 = vld [vmem:[%s3527_s3] sm:$0xff]  ;;  %2123 = vset.pattern.permute.xlu0 %v2346_v3  ;;  %186 = vperm.xlu2 %2125, %v161_v0  }
   0x3   :  { %180 = vperm.xlu1 %2124, %v159_v1   ;;  %174 = vperm.xlu0 %2123, %v157_v2  }
   0x4   :  { %20 = vsyncpa [#allocation5], 0  ;;  %v162_v4 = vld [vmem:[%s3527_s3 + $0x28] sm:$0xff]  ;;  %v160_v5 = vld [vmem:[%s3527_s3 + $0x18] sm:$0xff]  ;;  %v2347_v30 = vmov 1   ;;  %v2348_v31 = vmov 2   ;;  %v3540_v36 = vlaneseq }
   0x5   :  { %v158_v6 = vld [vmem:[%s3527_s3 + $0x8] sm:$0xff]  ;;  %v165_v7 = vld [vmem:[%s3527_s3 + $0x40] sm:$0xff]  ;;  %v164_v8 = vld [vmem:[%s3527_s3 + $0x38] sm:$0xff]  ;;  %vm326_vm0 = vcmask 1041408   ;;  %vm277_vm1 = vcmask 15360   ;;  %v3538_v41 = vmov 0.0  }
   0x6   :  { %v163_v9 = vld [vmem:[%s3527_s3 + $0x30] sm:$0xff]  ;;  %v168_v10 = vld [vmem:[%s3527_s3 + $0x58] sm:$0xff]  ;;  %v166_v12 = vld [vmem:[%s3527_s3 + $0x48] sm:$0xff]  ;;  %v2559_v37 = vand.u32 127, %v3540_v36  ;;  %s2351_s16 = smov 125   ;;  %s2353_s28 = smov 3  }
   0x7   :  { %v167_v11 = vld [vmem:[%s3527_s3 + $0x50] sm:$0xff]  ;;  %v170_v14 = vld [vmem:[%s3527_s3 + $0x68] sm:$0xff]  ;;  %v169_v15 = vld [vmem:[%s3527_s3 + $0x60] sm:$0xff]  ;;  %s1904_s27 = sshll.u32 %s3537_s13, 4  ;;  %s1905_s27 = int_to_ptr.hbm [resolvable:$true] %s1904_s27 }
   0x8   :  { %v171_v13 = vld [vmem:[%s3527_s3 + $0x70] sm:$0xff]  ;;  %v396_v16 = vld [vmem:[%s3524_s0 + $0x8] sm:$0xff]  ;;  %v395_v17 = vld [vmem:[%s3524_s0] sm:$0xff] }
   0x9   :  { %v172_v18 = vld [vmem:[%s3527_s3 + $0x78] sm:$0xff]  ;;  %v399_v19 = vld [vmem:[%s3524_s0 + $0x20] sm:$0xff]  ;;  %v397_v21 = vld [vmem:[%s3524_s0 + $0x10] sm:$0xff] }
   0xa   :  { %189 = vperm.xlu2 %2125, %v162_v4   ;;  %v398_v20 = vld [vmem:[%s3524_s0 + $0x18] sm:$0xff]  ;;  %v2501_v23 = vld [vmem:[%s3524_s0 + $0x30] sm:$0xff]  ;;  %v400_v24 = vld [vmem:[%s3524_s0 + $0x28] sm:$0xff] }
   0xb   :  { %183 = vperm.xlu1 %2124, %v160_v5   ;;  %177 = vperm.xlu0 %2123, %v158_v6   ;;  %v2496_v22 = vld [vmem:[%s3524_s0 + $0x38] sm:$0xff]  ;;  %v2511_v25 = vld [vmem:[%s3524_s0 + $0x50] sm:$0xff]  ;;  %v2516_v26 = vld [vmem:[%s3524_s0 + $0x48] sm:$0xff] }
   0xc   :  { %v2521_v27 = vld [vmem:[%s3524_s0 + $0x40] sm:$0xff]  ;;  %v2529_v28 = vld [vmem:[%s3524_s0 + $0x68] sm:$0xff] }
   0xd   :  { %v2534_v29 = vld [vmem:[%s3524_s0 + $0x60] sm:$0xff] }
   0xe   :  { %v276_v32 = vld [vmem:[%s3529_s5] sm:$0x3]  ;;  %s2350_s5 = smov 122  }
   0xf   :  { %1964 = vmatpush.msk.msra.mxu0 %vm326_vm0, %v276_v32  ;;  %2108 = vmatpush.msk.msra.mxu2 %vm326_vm0, %v276_v32 }
  0x10   :  { %2109 = vmatpush.msk.msra.mxu3 %vm326_vm0, %v276_v32 }
  0x12   :  { %198 = vperm.xlu2 %2125, %v165_v7  }
  0x13   :  { %195 = vperm.xlu1 %2124, %v164_v8   ;;  %192 = vperm.xlu0 %2123, %v163_v9  }
  0x1a   :  { %207 = vperm.xlu2 %2125, %v168_v10  }
  0x1b   :  { %204 = vperm.xlu1 %2124, %v167_v11   ;;  %201 = vperm.xlu0 %2123, %v166_v12  }
  0x22   :  { %216 = vperm.xlu2 %2125, %v171_v13  }
  0x23   :  { %213 = vperm.xlu1 %2124, %v170_v14   ;;  %210 = vperm.xlu0 %2123, %v169_v15  }
  0x2a   :  { %418 = vperm.xlu2 %2125, %v396_v16  }
  0x2b   :  { %413 = vperm.xlu1 %2124, %v395_v17   ;;  %219 = vperm.xlu0 %2123, %v172_v18  }
  0x32   :  { %433 = vperm.xlu2 %2125, %v399_v19  }
  0x33   :  { %428 = vperm.xlu1 %2124, %v398_v20   ;;  %423 = vperm.xlu0 %2123, %v397_v21  }
  0x3a   :  { %448 = vperm.xlu2 %2125, %v2496_v22  }
  0x3b   :  { %443 = vperm.xlu1 %2124, %v2501_v23   ;;  %438 = vperm.xlu0 %2123, %v400_v24  }
  0x42   :  { %463 = vperm.xlu2 %2125, %v2511_v25  }
  0x43   :  { %458 = vperm.xlu1 %2124, %v2516_v26   ;;  %453 = vperm.xlu0 %2123, %v2521_v27  }
  0x4a   :  { %478 = vperm.xlu2 %2125, %v2529_v28  }
  0x4b   :  { %473 = vperm.xlu1 %2124, %v2534_v29   ;;  %2128 = vset.pattern.permute.xlu0 %v2347_v30 }
  0x4c   :  { %512 = vperm.xlu0 %2128, %v396_v16  }
  0x52   :  { %2127 = vset.pattern.permute.xlu2 %v2348_v31 }
  0x53   :  { %2126 = vset.pattern.permute.xlu1 %v2347_v30  ;;  %668 = vperm.xlu2 %2127, %v395_v17  }
  0x54   :  { %508 = vperm.xlu1 %2126, %v395_v17   ;;  %2131 = vset.pattern.permute.xlu0 %v2348_v31 }
  0x55   :  { %680 = vperm.xlu0 %2131, %v398_v20  }
  0x5b   :  { %2130 = vset.pattern.permute.xlu2 %v2347_v30 }
  0x5c   :  { %v2546_v33 = vpop.permute.xlu2 %186  ;;  %2129 = vset.pattern.permute.xlu1 %v2348_v31  ;;  %516 = vperm.xlu2 %2130, %v397_v21  }
  0x5d   :  { %672 = vperm.xlu1 %2129, %v396_v16   ;;  %688 = vperm.xlu0 %2131, %v400_v24   ;;  %vm225_vm8 = vcmp.eq.s32.totalorder %v2559_v37, %v2546_v33 }
  0x5e   :  { %v1951_v56 = vsel %vm225_vm8, 1.0, %v3538_v41  ;;  %vm151_vm8 = vcmask 1024  }
  0x64   :  { %v2549_v34 = vpop.permute.xlu2 %189  ;;  %520 = vperm.xlu2 %2130, %v398_v20  }
  0x65   :  { %676 = vperm.xlu1 %2129, %v397_v21   ;;  %2136 = vset.pattern.permute.xlu0 %v2347_v30  ;;  %vm226_vm10 = vcmp.eq.s32.totalorder %v2559_v37, %v2549_v34 }
  0x66   :  { %536 = vperm.xlu0 %2136, %v2496_v22   ;;  %v1952_v61 = vsel %vm226_vm10, 1.0, %v3538_v41 }
  0x6c   :  { %v2553_v35 = vpop.permute.xlu2 %198  ;;  %2133 = vset.pattern.permute.xlu2 %v2348_v31 }
  0x6d   :  { %2132 = vset.pattern.permute.xlu1 %v2347_v30  ;;  %684 = vperm.xlu2 %2133, %v399_v19   ;;  %vm229_vm0 = vcmp.eq.s32.totalorder %v2559_v37, %v2553_v35 }
  0x6e   :  { %524 = vperm.xlu1 %2132, %v399_v19   ;;  %544 = vperm.xlu0 %2136, %v2516_v26   ;;  %v1955_v2 = vsel %vm229_vm0, 1.0, %v3538_v41 }
  0x74   :  { %v208_v38 = vpop.permute.xlu2 %207 }
  0x75   :  { %v181_v39 = vpop.permute.xlu1 %180  ;;  %v175_v40 = vpop.permute.xlu0 %174  ;;  %2134 = vset.pattern.permute.xlu2 %v2347_v30  ;;  %vm232_vm9 = vcmp.eq.s32.totalorder %v2559_v37, %v208_v38 }
  0x76   :  { %vm221_vm2 = vcmp.eq.s32.totalorder %v2559_v37, %v175_v40  ;;  %528 = vperm.xlu1 %2132, %v400_v24   ;;  %532 = vperm.xlu2 %2134, %v2501_v23   ;;  %vm223_vm5 = vcmp.eq.s32.totalorder %v2559_v37, %v181_v39  ;;  %v1958_v57 = vsel %vm232_vm9, 1.0, %v3538_v41 }
  0x77   :  { %v1947_v42 = vsel %vm221_vm2, 1.0, %v3538_v41  ;;  %v1949_v50 = vsel %vm223_vm5, 1.0, %v3538_v41  ;;  %vm1816_vm5 = vcmask 48128  }
  0x78   :  { %1965 = vmatmul.msk.f32.vlgmr.msra.gmra.mxu0 %vm277_vm1, %v1947_v42 }
  0x7c   :  { %v217_v43 = vpop.permute.xlu2 %216 }
  0x7d   :  { %vm235_vm3 = vcmp.eq.s32.totalorder %v2559_v37, %v217_v43  ;;  %v184_v44 = vpop.permute.xlu1 %183  ;;  %v178_v45 = vpop.permute.xlu0 %177 }
  0x7e   :  { %vm222_vm4 = vcmp.eq.s32.totalorder %v2559_v37, %v178_v45  ;;  %2135 = vset.pattern.permute.xlu1 %v2348_v31  ;;  %v1961_v46 = vsel %vm235_vm3, 1.0, %v3538_v41  ;;  %2137 = vset.pattern.permute.xlu2 %v2348_v31  ;;  %vm224_vm6 = vcmp.eq.s32.totalorder %v2559_v37, %v184_v44  ;;  %vm897_vm3 = vcmask 1042432  }
  0x7f   :  { %v1948_v47 = vsel %vm222_vm4, 1.0, %v3538_v41  ;;  %692 = vperm.xlu1 %2135, %v2501_v23   ;;  %1979 = vmatmul.msk.f32.vlgmr.msra.gmra.mxu3 %vm277_vm1, %v1961_v46  ;;  %v1950_v53 = vsel %vm224_vm6, 1.0, %v3538_v41  ;;  %vm848_vm4 = vcmask 23552  }
  0x80   :  { %1966 = vmatmul.msk.f32.gmra.mxu0 %vm277_vm1, %v1948_v47  ;;  %696 = vperm.xlu2 %2137, %v2496_v22  }
  0x84   :  { %v2626_v5 = vpop.permute.xlu2 %418 }
  0x85   :  { %v196_v48 = vpop.permute.xlu1 %195  ;;  %v193_v49 = vpop.permute.xlu0 %192 }
  0x86   :  { %vm227_vm13 = vcmp.eq.s32.totalorder %v2559_v37, %v193_v49  ;;  %vm228_vm15 = vcmp.eq.s32.totalorder %v2559_v37, %v196_v48 }
  0x87   :  { %700 = vperm.xlu1 %2135, %v2521_v27   ;;  %v1953_v63 = vsel %vm227_vm13, 1.0, %v3538_v41  ;;  %v1954_v1 = vsel %vm228_vm15, 1.0, %v3538_v41 }
  0x88   :  { %1967 = vmatmul.msk.f32.gmra.mxu0 %vm277_vm1, %v1949_v50  ;;  %2138 = vset.pattern.permute.xlu2 %v2347_v30 }
  0x89   :  { %540 = vperm.xlu2 %2138, %v2521_v27  }
  0x8c   :  { %v2630_v7 = vpop.permute.xlu2 %433 }
  0x8d   :  { %v205_v51 = vpop.permute.xlu1 %204  ;;  %v202_v52 = vpop.permute.xlu0 %201 }
  0x8e   :  { %vm231_vm7 = vcmp.eq.s32.totalorder %v2559_v37, %v205_v51  ;;  %vm230_vm2 = vcmp.eq.s32.totalorder %v2559_v37, %v202_v52 }
  0x8f   :  { %v1957_v54 = vsel %vm231_vm7, 1.0, %v3538_v41  ;;  %2140 = vset.pattern.permute.xlu1 %v2347_v30  ;;  %v1956_v4 = vsel %vm230_vm2, 1.0, %v3538_v41  ;;  %vm153_vm7 = vcmask 66560  }
  0x90   :  { %1968 = vmatmul.msk.f32.gmra.mxu0 %vm277_vm1, %v1950_v53  ;;  %1975 = vmatmul.msk.f32.vlgmr.msra.gmra.mxu2 %vm277_vm1, %v1957_v54  ;;  %v2699_v54 = vld [vmem:[%s3524_s0 + $0x70] sm:$0xff] }
  0x91   :  { %548 = vperm.xlu1 %2140, %v2511_v25   ;;  %2139 = vset.pattern.permute.xlu2 %v2348_v31 }
  0x92   :  { %704 = vperm.xlu2 %2139, %v2516_v26   ;;  %v2663_v26 = vld [vmem:[%s3524_s0 + $0x58] sm:$0xff] }
  0x94   :  { %v2634_v9 = vpop.permute.xlu2 %448 }
  0x95   :  { %v211_v55 = vpop.permute.xlu0 %210  ;;  %v214_v62 = vpop.permute.xlu1 %213 }
  0x96   :  { %vm233_vm11 = vcmp.eq.s32.totalorder %v2559_v37, %v211_v55  ;;  %vm234_vm14 = vcmp.eq.s32.totalorder %v2559_v37, %v214_v62 }
  0x97   :  { %v1959_v59 = vsel %vm233_vm11, 1.0, %v3538_v41  ;;  %v1960_v0 = vsel %vm234_vm14, 1.0, %v3538_v41 }
  0x98   :  { %1969 = vmatmul.msk.f32.gmra.mxu0 %vm277_vm1, %v1951_v56  ;;  %1976 = vmatmul.msk.f32.gmra.mxu2 %vm277_vm1, %v1958_v57 }
  0x9a   :  { %2141 = vset.pattern.permute.xlu2 %v2347_v30 }
  0x9c   :  { %v2640_v12 = vpop.permute.xlu2 %463 }
  0x9d   :  { %v220_v58 = vpop.permute.xlu0 %219  ;;  %v2628_v6 = vpop.permute.xlu1 %413 }
  0x9e   :  { %vm236_vm12 = vcmp.eq.s32.totalorder %v2559_v37, %v220_v58 }
  0x9f   :  { %v1962_v60 = vsel %vm236_vm12, 1.0, %v3538_v41 }
  0xa0   :  { %1970 = vmatmul.msk.f32.gmra.mxu0 %vm277_vm1, %v1952_v61  ;;  %1977 = vmatmul.msk.f32.gmra.mxu2 %vm277_vm1, %v1959_v59 }
  0xa1   :  { %1980 = vmatmul.msk.f32.gmra.mxu3 %vm277_vm1, %v1962_v60 }
  0xa4   :  { %v2646_v15 = vpop.permute.xlu2 %478 }
  0xa5   :  { %v2632_v8 = vpop.permute.xlu1 %428  ;;  %v2638_v11 = vpop.permute.xlu0 %423 }
  0xa8   :  { %1971 = vmatmul.msk.f32.gmra.mxu0 %vm277_vm1, %v1953_v63  ;;  %1978 = vmatmul.msk.f32.gmra.mxu2 %vm277_vm1, %v1960_v0 }
  0xad   :  { %v2636_v10 = vpop.permute.xlu1 %443  ;;  %v2644_v14 = vpop.permute.xlu0 %438 }
  0xae   :  { %v669_v18 = vpop.permute.xlu2 %668 }
  0xb0   :  { %1972 = vmatmul.msk.f32.gmra.mxu0 %vm277_vm1, %v1954_v1 }
  0xb5   :  { %v2642_v13 = vpop.permute.xlu1 %458  ;;  %v2650_v17 = vpop.permute.xlu0 %453 }
  0xb6   :  { %v517_v33 = vpop.permute.xlu2 %516 }
  0xb8   :  { %1973 = vmatmul.msk.f32.gmra.mxu0 %vm277_vm1, %v1955_v2 }
  0xbd   :  { %v2648_v16 = vpop.permute.xlu1 %473 }
  0xbe   :  { %v513_v23 = vpop.permute.xlu0 %512  ;;  %v521_v39 = vpop.permute.xlu2 %520 }
  0xc0   :  { %1974 = vmatmul.msk.f32.gmra.mxu0 %vm277_vm1, %v1956_v4  ;;  %vm1018_vm1 = vcmask 261120  }
  0xc6   :  { %v509_v19 = vpop.permute.xlu1 %508 }
  0xc7   :  { %v681_v45 = vpop.permute.xlu0 %680  ;;  %v685_v46 = vpop.permute.xlu2 %684 }
  0xcf   :  { %v673_v27 = vpop.permute.xlu1 %672  ;;  %v689_v55 = vpop.permute.xlu0 %688 }
  0xd0   :  { %v533_v56 = vpop.permute.xlu2 %532 }
  0xd7   :  { %v677_v38 = vpop.permute.xlu1 %676 }
  0xd8   :  { %v537_v59 = vpop.permute.xlu0 %536 }
  0xda   :  { %v697_v63 = vpop.permute.xlu2 %696 }
  0xe0   :  { %v525_v44 = vpop.permute.xlu1 %524 }
  0xe3   :  { %v541_v2 = vpop.permute.xlu2 %540 }
  0xe8   :  { %v529_v51 = vpop.permute.xlu1 %528 }
  0xf1   :  { %v693_v0 = vpop.permute.xlu1 %692 }
  0xf5   :  { %v2652_v20 = vpop.f32.mrf.mxu0 }
  0xf6   :  { %v571_v21 = vmul.f32 %v509_v19, %v2652_v20  ;;  %v731_v22 = vmul.f32 %v669_v18, %v2652_v20  ;;  %v2107_v18 = vld [vmem:[%s3530_s6 + $0x8] sm:$0xff] }
  0xf7   :  { %1049 = vmatpush.bf16.msrb.mxu2 %v2107_v18 }
  0xf8   :  { %763 = vrot.lane.b32.xlu1 %v731_v22, %s2350_s5  ;;  %603 = vrot.lane.b32.xlu2 %v571_v21, %s2351_s16  ;;  %v545_v22 = vpop.permute.xlu0 %544 }
  0xfd   :  { %v2658_v24 = vpop.f32.mrf.mxu0 }
  0xfe   :  { %v572_v32 = vmul.f32 %v513_v23, %v2658_v24  ;;  %v732_v35 = vmul.f32 %v673_v27, %v2658_v24  ;;  %v2106_v23 = vld [vmem:[%s3530_s6] sm:$0xff]  ;;  %v705_v27 = vpop.permute.xlu2 %704 }
  0xff   :  { %1050 = vmatpush.bf16.msrb.mxu2 %v2106_v23  ;;  %v2101_v23 = vld [vmem:[%s3525_s1 + $0x18] sm:$0xff] }
 0x100   :  { %556 = vperm.xlu1 %2140, %v2534_v29   ;;  %552 = vperm.xlu2 %2141, %v2663_v26  }
 0x101   :  { %605 = vrot.lane.b32.xlu0 %v572_v32, %s2351_s16 }
 0x105   :  { %v2669_v34 = vpop.f32.mrf.mxu0 }
 0x106   :  { %v573_v37 = vmul.f32 %v517_v33, %v2669_v34  ;;  %v733_v42 = vmul.f32 %v677_v38, %v2669_v34  ;;  %v2098_v33 = vld [vmem:[%s3525_s1] sm:$0xff] }
 0x107   :  { %2038 = vmatmul.msk.bf16.vlgmr.msrb.gmra.mxu2 %vm1018_vm1, %v2098_v33 }
 0x108   :  { %765 = vrot.lane.b32.xlu2 %v732_v35, %s2350_s5  ;;  %607 = vrot.lane.b32.xlu1 %v573_v37, %s2351_s16 }
 0x109   :  { %2142 = vset.pattern.permute.xlu2 %v2348_v31  ;;  %2144 = vset.pattern.permute.xlu1 %v2348_v31 }
 0x10d   :  { %v2677_v40 = vpop.f32.mrf.mxu0 }
 0x10e   :  { %v574_v43 = vmul.f32 %v521_v39, %v2677_v40  ;;  %v734_v48 = vmul.f32 %v681_v45, %v2677_v40 }
 0x110   :  { %712 = vperm.xlu2 %2142, %v2663_v26   ;;  %767 = vrot.lane.b32.xlu1 %v733_v42, %s2350_s5  ;;  %v847_v42 = vld [vmem:[%s3531_s7] sm:$0x7] }
 0x111   :  { %609 = vrot.lane.b32.xlu0 %v574_v43, %s2351_s16  ;;  %1981 = vmatpush.msk.msrb.mxu0 %vm897_vm3, %v847_v42 }
 0x112   :  { %2110 = vmatpush.msk.msra.mxu1 %vm897_vm3, %v847_v42  ;;  %2111 = vmatpush.msk.msrb.mxu3 %vm897_vm3, %v847_v42 }
 0x113   :  { %v2753_v39 = vpop.f32.mrf.mxu2 }
 0x115   :  { %v2684_v47 = vpop.f32.mrf.mxu0 }
 0x116   :  { %v575_v49 = vmul.f32 %v525_v44, %v2684_v47  ;;  %v735_v50 = vmul.f32 %v685_v46, %v2684_v47  ;;  %v495_v33 = vmul.f32 %v2630_v7, %v2684_v47 }
 0x118   :  { %769 = vrot.lane.b32.xlu2 %v734_v48, %s2350_s5  ;;  %611 = vrot.lane.b32.xlu1 %v575_v49, %s2351_s16  ;;  %v2099_v49 = vld [vmem:[%s3525_s1 + $0x8] sm:$0xff] }
 0x119   :  { %771 = vrot.lane.b32.xlu0 %v735_v50, %s2350_s5  ;;  %2143 = vset.pattern.permute.xlu2 %v2347_v30 }
 0x11a   :  { %2039 = vmatmul.msk.bf16.gmra.mxu2 %vm1018_vm1, %v2099_v49 }
 0x11b   :  { %v2762_v45 = vpop.f32.mrf.mxu2 }
 0x11d   :  { %v2693_v52 = vpop.f32.mrf.mxu0 }
 0x11e   :  { %v576_v53 = vmul.f32 %v529_v51, %v2693_v52  ;;  %v736_v58 = vmul.f32 %v689_v55, %v2693_v52  ;;  %v491_v51 = vmul.f32 %v2628_v6, %v2652_v20  ;;  %v492_v6 = vmul.f32 %v2626_v5, %v2658_v24 }
 0x11f   :  { %v496_v7 = vmul.f32 %v2644_v14, %v2693_v52 }
 0x120   :  { %720 = vperm.xlu1 %2144, %v2529_v28   ;;  %613 = vrot.lane.b32.xlu2 %v576_v53, %s2351_s16 }
 0x121   :  { %564 = vperm.xlu0 %2136, %v2699_v54  }
 0x125   :  { %v2704_v57 = vpop.f32.mrf.mxu0 }
 0x126   :  { %v577_v61 = vmul.f32 %v533_v56, %v2704_v57  ;;  %v737_v1 = vmul.f32 %v693_v0, %v2704_v57 }
 0x128   :  { %773 = vrot.lane.b32.xlu1 %v736_v58, %s2350_s5  ;;  %560 = vperm.xlu2 %2143, %v2529_v28   ;;  %v2721_v28 = vld [vmem:[%s3524_s0 + $0x78] sm:$0xff]  ;;  %v2781_v58 = vpop.f32.mrf.mxu2 }
 0x129   :  { %2145 = vset.pattern.permute.xlu0 %v2348_v31 }
 0x12a   :  { %708 = vperm.xlu0 %2145, %v2511_v25  }
 0x12d   :  { %v2711_v60 = vpop.f32.mrf.mxu0 }
 0x12e   :  { %v578_v62 = vmul.f32 %v537_v59, %v2711_v60  ;;  %v738_v25 = vmul.f32 %v697_v63, %v2711_v60 }
 0x130   :  { %615 = vrot.lane.b32.xlu1 %v577_v61, %s2351_s16  ;;  %617 = vrot.lane.b32.xlu2 %v578_v62, %s2351_s16 }
 0x132   :  { %716 = vperm.xlu0 %2145, %v2534_v29   ;;  %v701_v29 = vpop.permute.xlu1 %700 }
 0x135   :  { %v2727_v4 = vpop.f32.mrf.mxu0 }
 0x136   :  { %v739_v19 = vmul.f32 %v701_v29, %v2727_v4  ;;  %v579_v21 = vmul.f32 %v541_v2, %v2727_v4  ;;  %v493_v2 = vmul.f32 %v2638_v11, %v2669_v34 }
 0x138   :  { %777 = vrot.lane.b32.xlu1 %v738_v25, %s2350_s5  ;;  %568 = vperm.xlu2 %2143, %v2721_v28  }
 0x13a   :  { %775 = vrot.lane.b32.xlu0 %v737_v1, %s2350_s5  ;;  %v549_v38 = vpop.permute.xlu1 %548 }
 0x13b   :  { %v581_v43 = vmul.f32 %v549_v38, %v2753_v39 }
 0x13d   :  { %v2741_v32 = vpop.f32.mrf.mxu0 }
 0x13e   :  { %v580_v35 = vmul.f32 %v545_v22, %v2741_v32  ;;  %v740_v37 = vmul.f32 %v705_v27, %v2741_v32 }
 0x140   :  { %724 = vperm.xlu1 %2144, %v2699_v54   ;;  %779 = vrot.lane.b32.xlu2 %v739_v19, %s2350_s5 }
 0x142   :  { %619 = vrot.lane.b32.xlu0 %v579_v21, %s2351_s16  ;;  %v494_v21 = vmul.f32 %v2632_v8, %v2677_v40 }
 0x148   :  { %781 = vrot.lane.b32.xlu2 %v740_v37, %s2350_s5  ;;  %621 = vrot.lane.b32.xlu1 %v580_v35, %s2351_s16  ;;  %v2809_v35 = vpop.f32.mrf.mxu3  ;;  %v2811_v37 = vpop.f32.mrf.mxu2 }
 0x149   :  { %2147 = vset.pattern.permute.xlu1 %v2346_v3 }
 0x14a   :  { %728 = vperm.xlu0 %2145, %v2721_v28  }
 0x150   :  { %623 = vrot.lane.b32.xlu1 %v581_v43, %s2351_s16  ;;  %v2824_v49 = vpop.f32.mrf.mxu3 }
 0x152   :  { %2146 = vset.pattern.permute.xlu0 %v2346_v3  ;;  %v604_v44 = vpop.permute.xlu2 %603 }
 0x153   :  { %468 = vperm.xlu0 %2146, %v2663_v26   ;;  %v651_v26 = vadd.f32 %v604_v44, %v491_v51 }
 0x15a   :  { %v553_v46 = vpop.permute.xlu2 %552 }
 0x15b   :  { %v582_v48 = vmul.f32 %v553_v46, %v2762_v45  ;;  %483 = vperm.xlu0 %2146, %v2699_v54   ;;  %v2100_v54 = vld [vmem:[%s3525_s1 + $0x10] sm:$0xff]  ;;  %v2102_v46 = vld [vmem:[%s3525_s1 + $0x20] sm:$0xff] }
 0x15c   :  { %2040 = vmatmul.msk.bf16.gmra.mxu2 %vm1018_vm1, %v2100_v54 }
 0x15d   :  { %625 = vrot.lane.b32.xlu1 %v582_v48, %s2351_s16 }
 0x162   :  { %v766_v50 = vpop.permute.xlu2 %765 }
 0x16a   :  { %v764_v53 = vpop.permute.xlu1 %763  ;;  %v713_v55 = vpop.permute.xlu2 %712 }
 0x16b   :  { %v2773_v56 = vadd.f32 %v764_v53, %v651_v26 }
 0x16c   :  { %2041 = vmatmul.msk.bf16.gmra.mxu2 %vm1018_vm1, %v2101_v23 }
 0x16d   :  { %1982 = vmatmul.msk.f32.vlgmr.msrb.gmra.mxu0 %vm848_vm4, %v2773_v56 }
 0x172   :  { %v557_v59 = vpop.permute.xlu1 %556  ;;  %v770_v20 = vpop.permute.xlu2 %769 }
 0x173   :  { %v583_v61 = vmul.f32 %v557_v59, %v2781_v58  ;;  %v606_v62 = vpop.permute.xlu0 %605  ;;  %v742_v59 = vmul.f32 %v713_v55, %v2762_v45  ;;  %v498_v55 = vmul.f32 %v2634_v9, %v2711_v60 }
 0x174   :  { %v652_v63 = vadd.f32 %v606_v62, %v492_v6 }
 0x175   :  { %627 = vrot.lane.b32.xlu0 %v583_v61, %s2351_s16 }
 0x176   :  { %v2787_v0 = vadd.f32 %v766_v50, %v652_v63 }
 0x178   :  { %1983 = vmatmul.msk.f32.gmra.mxu0 %vm848_vm4, %v2787_v0 }
 0x17a   :  { %v608_v25 = vpop.permute.xlu1 %607  ;;  %v614_v1 = vpop.permute.xlu2 %613 }
 0x17b   :  { %v653_v29 = vadd.f32 %v608_v25, %v493_v2  ;;  %v656_v48 = vadd.f32 %v614_v1, %v496_v7 }
 0x17c   :  { %2042 = vmatmul.msk.bf16.gmra.mxu2 %vm1018_vm1, %v2102_v46 }
 0x182   :  { %v768_v18 = vpop.permute.xlu1 %767  ;;  %v561_v19 = vpop.permute.xlu2 %560 }
 0x183   :  { %v2793_v5 = vadd.f32 %v768_v18, %v653_v29  ;;  %v610_v24 = vpop.permute.xlu0 %609  ;;  %v584_v25 = vmul.f32 %v561_v19, %v2811_v37  ;;  %v499_v19 = vmul.f32 %v2650_v17, %v2727_v4  ;;  %v500_v17 = vmul.f32 %v2642_v13, %v2741_v32  ;;  %v2103_v13 = vld [vmem:[%s3525_s1 + $0x28] sm:$0xff]  ;;  %v2104_v32 = vld [vmem:[%s3525_s1 + $0x30] sm:$0xff] }
 0x184   :  { %v654_v22 = vadd.f32 %v610_v24, %v494_v21 }
 0x185   :  { %1984 = vmatmul.msk.f32.gmra.mxu0 %vm848_vm4, %v2793_v5 }
 0x186   :  { %v2803_v34 = vadd.f32 %v770_v20, %v654_v22  ;;  %v497_v20 = vmul.f32 %v2636_v10, %v2704_v57 }
 0x18a   :  { %v612_v11 = vpop.permute.xlu1 %611  ;;  %v618_v8 = vpop.permute.xlu2 %617 }
 0x18b   :  { %v772_v27 = vpop.permute.xlu0 %771  ;;  %v655_v40 = vadd.f32 %v612_v11, %v495_v33  ;;  %v658_v29 = vadd.f32 %v618_v8, %v498_v55  ;;  %v501_v8 = vmul.f32 %v2640_v12, %v2753_v39 }
 0x18c   :  { %2043 = vmatmul.msk.bf16.gmra.mxu2 %vm1018_vm1, %v2103_v13 }
 0x18d   :  { %1985 = vmatmul.msk.f32.gmra.mxu0 %vm848_vm4, %v2803_v34  ;;  %v2813_v42 = vadd.f32 %v772_v27, %v655_v40 }
 0x192   :  { %v721_v38 = vpop.permute.xlu1 %720  ;;  %v569_v47 = vpop.permute.xlu2 %568 }
 0x193   :  { %v565_v43 = vpop.permute.xlu0 %564  ;;  %v744_v44 = vmul.f32 %v721_v38, %v2811_v37  ;;  %v586_v51 = vmul.f32 %v569_v47, %v2824_v49  ;;  %v2105_v47 = vld [vmem:[%s3525_s1 + $0x38] sm:$0xff] }
 0x194   :  { %v585_v18 = vmul.f32 %v565_v43, %v2809_v35 }
 0x195   :  { %1986 = vmatmul.msk.f32.gmra.mxu0 %vm848_vm4, %v2813_v42  ;;  %789 = vrot.lane.b32.xlu0 %v744_v44, %s2350_s5 }
 0x19a   :  { %v774_v50 = vpop.permute.xlu1 %773  ;;  %v780_v60 = vpop.permute.xlu2 %779 }
 0x19b   :  { %v2828_v26 = vadd.f32 %v774_v50, %v656_v48  ;;  %v1163_v50 = vld [vmem:[%s3533_s9 + $0x18] sm:$0xff] }
 0x19c   :  { %v709_v53 = vpop.permute.xlu0 %708  ;;  %2044 = vmatmul.msk.bf16.gmra.mxu2 %vm1018_vm1, %v2104_v32  ;;  %1240 = vmatpush.msra.mxu3 %v1163_v50 }
 0x19d   :  { %v741_v54 = vmul.f32 %v709_v53, %v2753_v39  ;;  %1987 = vmatmul.msk.f32.gmra.mxu0 %vm848_vm4, %v2828_v26  ;;  %633 = vrot.lane.b32.xlu0 %v586_v51, %s2351_s16  ;;  %v1161_v53 = vld [vmem:[%s3533_s9 + $0x8] sm:$0xff] }
 0x19f   :  { %783 = vrot.lane.b32.xlu2 %v741_v54, %s2350_s5  ;;  %v1052_v54 = vpop.f32.mrf.mxu2 }
 0x1a2   :  { %v616_v14 = vpop.permute.xlu1 %615  ;;  %v782_v11 = vpop.permute.xlu2 %781 }
 0x1a3   :  { %v657_v62 = vadd.f32 %v616_v14, %v497_v20 }
 0x1a4   :  { %v717_v52 = vpop.permute.xlu0 %716 }
 0x1a5   :  { %v743_v6 = vmul.f32 %v717_v52, %v2781_v58  ;;  %1433 = vperm.xlu0 %2146, %v2773_v56   ;;  %v1160_v52 = vld [vmem:[%s3533_s9] sm:$0xff] }
 0x1a7   :  { %785 = vrot.lane.b32.xlu2 %v742_v59, %s2350_s5  ;;  %787 = vrot.lane.b32.xlu1 %v743_v6, %s2350_s5  ;;  %v2916_v59 = vld [vmem:[%s3534_s10] sm:$0x7] }
 0x1a8   :  { %2079 = vmatpush.xpose.msk.msrb.mxu1 %vm1018_vm1, %v2916_v59 }
 0x1aa   :  { %v778_v61 = vpop.permute.xlu1 %777 }
 0x1ab   :  { %v2853_v24 = vadd.f32 %v778_v61, %v658_v29  ;;  %v503_v61 = vmul.f32 %v2648_v16, %v2781_v58  ;;  %v2931_v16 = vld [vmem:[%s3532_s8] ss:$0 sm:$0xff]  ;;  %s2352_s8 = smov 6  }
 0x1ac   :  { %v776_v63 = vpop.permute.xlu0 %775  ;;  %2045 = vmatmul.msk.bf16.gmra.mxu2 %vm1018_vm1, %v2105_v47 }
 0x1ad   :  { %v2843_v1 = vadd.f32 %v776_v63, %v657_v62  ;;  %v1054_v62 = vpop.f32.mrf.mxu2 }
 0x1af   :  { %1988 = vmatmul.msk.f32.gmra.mxu0 %vm848_vm4, %v2843_v1  ;;  %629 = vrot.lane.b32.xlu2 %v584_v25, %s2351_s16 }
 0x1b0   :  { %488 = vperm.xlu1 %2147, %v2721_v28  }
 0x1b2   :  { %v725_v2 = vpop.permute.xlu1 %724 }
 0x1b3   :  { %v745_v10 = vmul.f32 %v725_v2, %v2809_v35 }
 0x1b4   :  { %v620_v57 = vpop.permute.xlu0 %619 }
 0x1b5   :  { %v659_v9 = vadd.f32 %v620_v57, %v499_v19  ;;  %v1057_v58 = vpop.f32.mrf.mxu2 }
 0x1b7   :  { %1989 = vmatmul.msk.f32.gmra.mxu0 %vm848_vm4, %v2853_v24  ;;  %631 = vrot.lane.b32.xlu2 %v585_v18, %s2351_s16  ;;  %v2862_v21 = vadd.f32 %v780_v60, %v659_v9 }
 0x1b8   :  { %791 = vrot.lane.b32.xlu1 %v745_v10, %s2350_s5  ;;  %v504_v10 = vmul.f32 %v2646_v15, %v2811_v37 }
 0x1b9   :  { %2150 = vset.pattern.permute.xlu1 %v2348_v31 }
 0x1ba   :  { %v622_v23 = vpop.permute.xlu1 %621 }
 0x1bb   :  { %v660_v4 = vadd.f32 %v622_v23, %v500_v17 }
 0x1bc   :  { %v729_v28 = vpop.permute.xlu0 %728 }
 0x1bd   :  { %v746_v22 = vmul.f32 %v729_v28, %v2824_v49  ;;  %v2870_v27 = vadd.f32 %v782_v11, %v660_v4  ;;  %v1059_v32 = vpop.f32.mrf.mxu2 }
 0x1bf   :  { %1990 = vmatmul.msk.f32.gmra.mxu0 %vm848_vm4, %v2862_v21  ;;  %793 = vrot.lane.b32.xlu2 %v746_v22, %s2350_s5  ;;  %s1893_s5 = sshll.u32 %s3536_s12, 4  ;;  %s2356_s12 = smov [#allocation4]   ;;  %s1894_s5 = int_to_ptr.hbm [resolvable:$true] %s1893_s5 }
 0x1c0   :  { %s1902_s25 = sshll.u32 %s2356_s12, 4  ;;  %s1903_s25 = int_to_ptr.vmem [resolvable:$true] %s1902_s25 }
 0x1c2   :  { %v624_v33 = vpop.permute.xlu1 %623 }
 0x1c3   :  { %v661_v40 = vadd.f32 %v624_v33, %v501_v8 }
 0x1c5   :  { %v469_v44 = vpop.permute.xlu0 %468 }
 0x1c6   :  { %v502_v46 = vmul.f32 %v469_v44, %v2762_v45  ;;  %v1162_v45 = vld [vmem:[%s3533_s9 + $0x10] sm:$0xff] }
 0x1c7   :  { %1513 = vperm.xlu2 %2143, %v2773_v56   ;;  %1991 = vmatmul.msk.f32.gmra.mxu0 %vm848_vm4, %v2870_v27 }
 0x1c8   :  { %1241 = vmatpush.msra.mxu3 %v1162_v45 }
 0x1ca   :  { %1242 = vmatpush.msra.mxu3 %v1161_v53 }
 0x1cc   :  { %1243 = vmatpush.msra.mxu3 %v1160_v52 }
 0x1cd   :  { %v484_v51 = vpop.permute.xlu0 %483 }
 0x1ce   :  { %v505_v4 = vmul.f32 %v484_v51, %v2809_v35 }
 0x1cf   :  { %2148 = vset.pattern.permute.xlu2 %v2346_v3  ;;  %v626_v7 = vpop.permute.xlu1 %625 }
 0x1d0   :  { %v662_v12 = vadd.f32 %v626_v7, %v502_v46 }
 0x1e7   :  { %v628_v6 = vpop.permute.xlu0 %627 }
 0x1e8   :  { %v663_v63 = vadd.f32 %v628_v6, %v503_v61 }
 0x1ea   :  { %v918_v14 = vpop.f32.mrf.mxu0 }
 0x1eb   :  { %v1053_v19 = vadd.f32 %v1052_v54, %v918_v14 }
 0x1ed   :  { %v1096_v22 = vadd.f32 %v2931_v16, %v1053_v19 }
 0x1ef   :  { %2262 = vtanh.f32 %v1096_v22 }
 0x1f5   :  { %v921_v25 = vpop.f32.mrf.mxu0  ;;  %v2263_v44 = vpop.eup %2262 }
 0x1f6   :  { %v1055_v11 = vadd.f32 %v1054_v62, %v921_v25  ;;  %v2947_v7 = vmul.f32 %v2263_v44, %v2263_v44 }
 0x1f9   :  { %v784_v38 = vpop.permute.xlu2 %783 }
 0x1fa   :  { %v2886_v43 = vadd.f32 %v784_v38, %v661_v40  ;;  %v1097_v40 = vadd.f32 %v2931_v16, %v1055_v11 }
 0x1fc   :  { %1473 = vperm.xlu2 %2148, %v2886_v43   ;;  %1992 = vmatmul.msk.f32.vlgmr.msra.gmra.mxu1 %vm848_vm4, %v2886_v43  ;;  %2264 = vtanh.f32 %v1097_v40 }
 0x201   :  { %v786_v39 = vpop.permute.xlu2 %785 }
 0x202   :  { %v2896_v48 = vadd.f32 %v786_v39, %v662_v12  ;;  %v924_v9 = vpop.f32.mrf.mxu0  ;;  %v1062_v12 = vpop.f32.mrf.mxu2  ;;  %v3541_v39 = vsub.f32 1.0, %v2947_v7 }
 0x203   :  { %v1058_v35 = vadd.f32 %v1057_v58, %v924_v9  ;;  %v2265_v50 = vpop.eup %2264 }
 0x204   :  { %1993 = vmatmul.msk.f32.gmra.mxu1 %vm848_vm4, %v2896_v48  ;;  %2154 = vset.pattern.permute.xlu2 %v2348_v31  ;;  %v2958_v45 = vmul.f32 %v2265_v50, %v2265_v50 }
 0x205   :  { %v1098_v47 = vadd.f32 %v2931_v16, %v1058_v35 }
 0x206   :  { %v1145_v54 = vsub.f32 1.0, %v2958_v45 }
 0x207   :  { %v790_v2 = vpop.permute.xlu0 %789  ;;  %2266 = vtanh.f32 %v1098_v47 }
 0x209   :  { %v630_v20 = vpop.permute.xlu2 %629 }
 0x20a   :  { %v664_v18 = vadd.f32 %v630_v20, %v504_v10  ;;  %v1064_v6 = vpop.f32.mrf.mxu2 }
 0x20c   :  { %v2933_v60 = vadd.f32 %v790_v2, %v664_v18 }
 0x20d   :  { %v2267_v14 = vpop.eup %2266 }
 0x20e   :  { %v2971_v61 = vmul.f32 %v2267_v14, %v2267_v14 }
 0x20f   :  { %v634_v37 = vpop.permute.xlu0 %633 }
 0x211   :  { %v632_v57 = vpop.permute.xlu2 %631 }
 0x212   :  { %v665_v33 = vadd.f32 %v632_v57, %v505_v4  ;;  %v1067_v2 = vpop.f32.mrf.mxu2 }
 0x219   :  { %v788_v55 = vpop.permute.xlu1 %787  ;;  %v794_v17 = vpop.permute.xlu2 %793 }
 0x21a   :  { %v2922_v29 = vadd.f32 %v788_v55, %v663_v63  ;;  %v1146_v63 = vsub.f32 1.0, %v2971_v61 }
 0x21c   :  { %1994 = vmatmul.msk.f32.gmra.mxu1 %vm848_vm4, %v2922_v29 }
 0x222   :  { %v489_v28 = vpop.permute.xlu1 %488 }
 0x223   :  { %v506_v15 = vmul.f32 %v489_v28, %v2824_v49  ;;  %v927_v49 = vpop.f32.mrf.mxu0  ;;  %v1069_v28 = vpop.f32.mrf.mxu2 }
 0x224   :  { %1995 = vmatmul.msk.f32.gmra.mxu1 %vm848_vm4, %v2933_v60  ;;  %v1060_v51 = vadd.f32 %v1059_v32, %v927_v49 }
 0x225   :  { %v666_v23 = vadd.f32 %v634_v37, %v506_v15 }
 0x226   :  { %v1099_v53 = vadd.f32 %v2931_v16, %v1060_v51 }
 0x227   :  { %v2940_v13 = vadd.f32 %v794_v17, %v666_v23 }
 0x228   :  { %2268 = vtanh.f32 %v1099_v53 }
 0x229   :  { %1653 = vperm.xlu2 %2154, %v2940_v13   ;;  %1997 = vmatmul.msk.f32.vlgmr.msrb.gmra.mxu3 %vm848_vm4, %v2940_v13 }
 0x22a   :  { %v792_v8 = vpop.permute.xlu1 %791 }
 0x22b   :  { %v825_v38 = vadd.f32 %v792_v8, %v665_v33  ;;  %v930_v46 = vpop.f32.mrf.mxu0 }
 0x22c   :  { %v1063_v20 = vadd.f32 %v1062_v12, %v930_v46 }
 0x22d   :  { %1649 = vperm.xlu1 %2150, %v825_v38   ;;  %1489 = vperm.xlu0 %2146, %v825_v38  }
 0x22e   :  { %1996 = vmatmul.msk.f32.gmra.mxu1 %vm848_vm4, %v825_v38  ;;  %v1100_v62 = vadd.f32 %v2931_v16, %v1063_v20  ;;  %v2269_v25 = vpop.eup %2268 }
 0x22f   :  { %v2983_v10 = vmul.f32 %v2269_v25, %v2269_v25 }
 0x230   :  { %2270 = vtanh.f32 %v1100_v62 }
 0x231   :  { %1637 = vperm.xlu2 %2154, %v2896_v48   ;;  %2046 = vmatmul.msk.f32.vlgmr.msra.gmra.mxu3 %vm1018_vm1, %v2263_v44  ;;  %v1147_v18 = vsub.f32 1.0, %v2983_v10 }
 0x233   :  { %v933_v52 = vpop.f32.mrf.mxu0 }
 0x235   :  { %1633 = vperm.xlu1 %2150, %v2886_v43   ;;  %2149 = vset.pattern.permute.xlu0 %v2347_v30 }
 0x236   :  { %2080 = vmatmul.msk.f32.vlgmr.msrb.gmra.mxu1 %vm1018_vm1, %v3541_v39  ;;  %1569 = vperm.xlu0 %2149, %v825_v38   ;;  %v2271_v19 = vpop.eup %2270 }
 0x237   :  { %v2997_v22 = vmul.f32 %v2271_v19, %v2271_v19 }
 0x239   :  { %2155 = vset.pattern.permute.xlu2 %v2346_v3  ;;  %2047 = vmatmul.msk.f32.gmra.mxu3 %vm1018_vm1, %v2265_v50  ;;  %v1148_v37 = vsub.f32 1.0, %v2997_v22 }
 0x23a   :  { %1441 = vperm.xlu2 %2155, %v2793_v5  }
 0x23b   :  { %v936_v55 = vpop.f32.mrf.mxu0 }
 0x23c   :  { %v1068_v58 = vadd.f32 %v1067_v2, %v936_v55 }
 0x23d   :  { %2151 = vset.pattern.permute.xlu1 %v2346_v3 }
 0x23e   :  { %2081 = vmatmul.msk.f32.gmra.mxu1 %vm1018_vm1, %v1145_v54  ;;  %1437 = vperm.xlu1 %2151, %v2787_v0   ;;  %v1102_v15 = vadd.f32 %v2931_v16, %v1068_v58 }
 0x23f   :  { %1553 = vperm.xlu0 %2149, %v2886_v43   ;;  %v1065_v43 = vadd.f32 %v1064_v6, %v933_v52 }
 0x241   :  { %2048 = vmatmul.msk.f32.gmra.mxu3 %vm1018_vm1, %v2267_v14  ;;  %v1101_v57 = vadd.f32 %v2931_v16, %v1065_v43  ;;  %v3052_v14 = vpop.permute.xlu2 %1513 }
 0x242   :  { %2158 = vset.pattern.permute.xlu2 %v2348_v31 }
 0x243   :  { %1641 = vperm.xlu2 %2158, %v2922_v29   ;;  %2272 = vtanh.f32 %v1101_v57  ;;  %v939_v9 = vpop.f32.mrf.mxu0 }
 0x244   :  { %2274 = vtanh.f32 %v1102_v15  ;;  %v1070_v17 = vadd.f32 %v1069_v28, %v939_v9 }
 0x246   :  { %2082 = vmatmul.msk.f32.gmra.mxu1 %vm1018_vm1, %v1146_v63  ;;  %1493 = vperm.xlu1 %2151, %v2940_v13   ;;  %v1103_v32 = vadd.f32 %v2931_v16, %v1070_v17 }
 0x247   :  { %1517 = vperm.xlu0 %2149, %v2787_v0  }
 0x248   :  { %2276 = vtanh.f32 %v1103_v32 }
 0x249   :  { %2049 = vmatmul.msk.f32.gmra.mxu3 %vm1018_vm1, %v2269_v25  ;;  %v2273_v23 = vpop.eup %2272 }
 0x24a   :  { %v3009_v4 = vmul.f32 %v2273_v23, %v2273_v23  ;;  %v2275_v49 = vpop.eup %2274 }
 0x24b   :  { %2160 = vset.pattern.permute.xlu2 %v2347_v30  ;;  %v942_v11 = vpop.f32.mrf.mxu0  ;;  %v3021_v8 = vmul.f32 %v2275_v49, %v2275_v49 }
 0x24c   :  { %1525 = vperm.xlu2 %2160, %v2803_v34   ;;  %v1149_v33 = vsub.f32 1.0, %v3009_v4 }
 0x24d   :  { %v1150_v35 = vsub.f32 1.0, %v3021_v8 }
 0x24e   :  { %2083 = vmatmul.msk.f32.gmra.mxu1 %vm1018_vm1, %v1147_v18  ;;  %2153 = vset.pattern.permute.xlu1 %v2347_v30  ;;  %v2277_v47 = vpop.eup %2276 }
 0x24f   :  { %2152 = vset.pattern.permute.xlu0 %v2346_v3  ;;  %1573 = vperm.xlu1 %2153, %v2940_v13   ;;  %v1072_v13 = vpop.f32.mrf.mxu2  ;;  %v3035_v46 = vmul.f32 %v2277_v47, %v2277_v47 }
 0x250   :  { %1477 = vperm.xlu0 %2152, %v2896_v48  }
 0x251   :  { %2050 = vmatmul.msk.f32.gmra.mxu3 %vm1018_vm1, %v2271_v19  ;;  %v1151_v50 = vsub.f32 1.0, %v3035_v46 }
 0x253   :  { %v945_v38 = vpop.f32.mrf.mxu0 }
 0x254   :  { %2161 = vset.pattern.permute.xlu2 %v2346_v3 }
 0x255   :  { %1485 = vperm.xlu2 %2161, %v2933_v60  }
 0x256   :  { %2084 = vmatmul.msk.f32.gmra.mxu1 %vm1018_vm1, %v1148_v37  ;;  %v3067_v55 = vpop.permute.xlu2 %1473 }
 0x257   :  { %1557 = vperm.xlu1 %2153, %v2896_v48   ;;  %v1073_v48 = vadd.f32 %v1072_v13, %v942_v11  ;;  %v1074_v44 = vpop.f32.mrf.mxu2  ;;  %3543 = vst [vmem:[#allocation8_spill] sm:$0xff] %v3067_v55 }
 0x258   :  { %2163 = vset.pattern.permute.xlu0 %v2348_v31 }
 0x259   :  { %1645 = vperm.xlu0 %2163, %v2933_v60   ;;  %2051 = vmatmul.msk.f32.gmra.mxu3 %vm1018_vm1, %v2273_v23  ;;  %v1104_v40 = vadd.f32 %v2931_v16, %v1073_v48 }
 0x25b   :  { %2278 = vtanh.f32 %v1104_v40 }
 0x25d   :  { %2162 = vset.pattern.permute.xlu2 %v2347_v30 }
 0x25e   :  { %2085 = vmatmul.msk.f32.gmra.mxu1 %vm1018_vm1, %v1149_v33  ;;  %1565 = vperm.xlu2 %2162, %v2933_v60   ;;  %v1075_v60 = vadd.f32 %v1074_v44, %v945_v38 }
 0x25f   :  { %1521 = vperm.xlu1 %2153, %v2793_v5   ;;  %v1077_v20 = vpop.f32.mrf.mxu2 }
 0x260   :  { %v1105_v12 = vadd.f32 %v2931_v16, %v1075_v60 }
 0x261   :  { %2166 = vset.pattern.permute.xlu0 %v2346_v3  ;;  %2052 = vmatmul.msk.f32.gmra.mxu3 %vm1018_vm1, %v2275_v49  ;;  %v2279_v51 = vpop.eup %2278 }
 0x262   :  { %1453 = vperm.xlu0 %2166, %v2828_v26   ;;  %2280 = vtanh.f32 %v1105_v12  ;;  %v3048_v53 = vmul.f32 %v2279_v51, %v2279_v51 }
 0x264   :  { %v1152_v52 = vsub.f32 1.0, %v3048_v53 }
 0x266   :  { %2086 = vmatmul.msk.f32.gmra.mxu1 %vm1018_vm1, %v1150_v35  ;;  %2164 = vset.pattern.permute.xlu2 %v2346_v3 }
 0x267   :  { %1449 = vperm.xlu2 %2164, %v2813_v42   ;;  %2156 = vset.pattern.permute.xlu1 %v2346_v3  ;;  %v1079_v57 = vpop.f32.mrf.mxu2 }
 0x268   :  { %1481 = vperm.xlu1 %2156, %v2922_v29   ;;  %v2281_v6 = vpop.eup %2280 }
 0x269   :  { %2053 = vmatmul.msk.f32.gmra.mxu3 %vm1018_vm1, %v2277_v47  ;;  %v3061_v62 = vmul.f32 %v2281_v6, %v2281_v6 }
 0x26a   :  { %2169 = vset.pattern.permute.xlu0 %v2347_v30 }
 0x26b   :  { %1537 = vperm.xlu0 %2169, %v2843_v1   ;;  %v1153_v43 = vsub.f32 1.0, %v3061_v62 }
 0x26e   :  { %2087 = vmatmul.msk.f32.gmra.mxu1 %vm1018_vm1, %v1151_v50 }
 0x26f   :  { %2167 = vset.pattern.permute.xlu2 %v2347_v30  ;;  %v1082_v32 = vpop.f32.mrf.mxu2 }
 0x270   :  { %1533 = vperm.xlu2 %2167, %v2828_v26   ;;  %2157 = vset.pattern.permute.xlu1 %v2347_v30 }
 0x271   :  { %2054 = vmatmul.msk.f32.gmra.mxu3 %vm1018_vm1, %v2279_v51  ;;  %1561 = vperm.xlu1 %2157, %v2922_v29  }
 0x273   :  { %2174 = vset.pattern.permute.xlu0 %v2346_v3 }
 0x274   :  { %1465 = vperm.xlu0 %2174, %v2862_v21  }
 0x276   :  { %2088 = vmatmul.msk.f32.gmra.mxu1 %vm1018_vm1, %v1152_v52 }
 0x277   :  { %v1084_v48 = vpop.f32.mrf.mxu2 }
 0x278   :  { %2171 = vset.pattern.permute.xlu2 %v2346_v3 }
 0x279   :  { %1461 = vperm.xlu2 %2171, %v2853_v24   ;;  %2159 = vset.pattern.permute.xlu1 %v2346_v3  ;;  %v948_v29 = vpop.f32.mrf.mxu1 }
 0x27a   :  { %2055 = vmatmul.msk.f32.gmra.mxu3 %vm1018_vm1, %v2281_v6  ;;  %v1078_v25 = vadd.f32 %v1077_v20, %v948_v29  ;;  %1445 = vperm.xlu1 %2159, %v2803_v34  }
 0x27c   :  { %v1106_v2 = vadd.f32 %v2931_v16, %v1078_v25  ;;  %2176 = vset.pattern.permute.xlu0 %v2348_v31 }
 0x27d   :  { %1625 = vperm.xlu0 %2176, %v2862_v21  }
 0x27e   :  { %2282 = vtanh.f32 %v1106_v2  ;;  %2089 = vmatmul.msk.f32.gmra.mxu1 %vm1018_vm1, %v1153_v43 }
 0x27f   :  { %v1087_v6 = vpop.f32.mrf.mxu2 }
 0x281   :  { %2173 = vset.pattern.permute.xlu2 %v2348_v31  ;;  %v951_v19 = vpop.f32.mrf.mxu1 }
 0x282   :  { %v1080_v58 = vadd.f32 %v1079_v57, %v951_v19  ;;  %1621 = vperm.xlu2 %2173, %v2853_v24   ;;  %2165 = vset.pattern.permute.xlu1 %v2347_v30 }
 0x283   :  { %v3079_v9 = vpop.permute.xlu2 %1653  ;;  %1529 = vperm.xlu1 %2165, %v2813_v42  }
 0x284   :  { %v2283_v28 = vpop.eup %2282  ;;  %v1107_v15 = vadd.f32 %v2931_v16, %v1080_v58 }
 0x285   :  { %1609 = vperm.xlu0 %2176, %v2813_v42   ;;  %2056 = vmatmul.msk.f32.gmra.mxu3 %vm1018_vm1, %v2283_v28  ;;  %v3085_v23 = vmul.f32 %v2283_v28, %v2283_v28 }
 0x286   :  { %2284 = vtanh.f32 %v1107_v15 }
 0x287   :  { %v1154_v17 = vsub.f32 1.0, %v3085_v23 }
 0x289   :  { %2090 = vmatmul.msk.f32.gmra.mxu1 %vm1018_vm1, %v1154_v17 }
 0x28a   :  { %2175 = vset.pattern.permute.xlu2 %v2347_v30 }
 0x28b   :  { %1545 = vperm.xlu2 %2175, %v2862_v21   ;;  %v3093_v11 = vpop.permute.xlu2 %1637  ;;  %2168 = vset.pattern.permute.xlu1 %v2346_v3 }
 0x28c   :  { %v2285_v42 = vpop.eup %2284  ;;  %1457 = vperm.xlu1 %2168, %v2843_v1  }
 0x28d   :  { %1597 = vperm.xlu0 %2176, %v2787_v0   ;;  %2057 = vmatmul.msk.f32.gmra.mxu3 %vm1018_vm1, %v2285_v42  ;;  %v3099_v13 = vmul.f32 %v2285_v42, %v2285_v42  ;;  %v3110_v0 = vpop.permute.xlu0 %1433 }
 0x28e   :  { %3544 = vst [vmem:[#allocation9_spill] sm:$0xff] %v3110_v0 }
 0x28f   :  { %v1155_v49 = vsub.f32 1.0, %v3099_v13 }
 0x291   :  { %2091 = vmatmul.msk.f32.gmra.mxu1 %vm1018_vm1, %v1155_v49 }
 0x293   :  { %1549 = vperm.xlu2 %2175, %v2870_v27  }
 0x294   :  { %v3106_v21 = vpop.permute.xlu2 %1441  ;;  %2170 = vset.pattern.permute.xlu1 %v2348_v31 }
 0x295   :  { %1617 = vperm.xlu1 %2170, %v2843_v1  }
 0x299   :  { %v954_v40 = vpop.f32.mrf.mxu1 }
 0x29a   :  { %v1083_v38 = vadd.f32 %v1082_v32, %v954_v40 }
 0x29b   :  { %2178 = vset.pattern.permute.xlu2 %v2348_v31 }
 0x29c   :  { %v1108_v44 = vadd.f32 %v2931_v16, %v1083_v38  ;;  %1613 = vperm.xlu2 %2178, %v2828_v26  }
 0x29d   :  { %v3115_v47 = vpop.permute.xlu2 %1641  ;;  %2172 = vset.pattern.permute.xlu1 %v2347_v30 }
 0x29e   :  { %2286 = vtanh.f32 %v1108_v44  ;;  %1541 = vperm.xlu1 %2172, %v2853_v24  }
 0x29f   :  { %v3119_v60 = vpop.permute.xlu1 %1649  ;;  %v3121_v1 = vpop.permute.xlu0 %1489 }
 0x2a1   :  { %v957_v12 = vpop.f32.mrf.mxu1 }
 0x2a2   :  { %v1085_v51 = vadd.f32 %v1084_v48, %v957_v12 }
 0x2a4   :  { %v2287_v20 = vpop.eup %2286  ;;  %v1109_v29 = vadd.f32 %v2931_v16, %v1085_v51  ;;  %1601 = vperm.xlu2 %2178, %v2793_v5   ;;  %v1089_v5 = vpop.f32.mrf.mxu2 }
 0x2a5   :  { %2058 = vmatmul.msk.f32.gmra.mxu3 %vm1018_vm1, %v2287_v20  ;;  %v1140_v26 = vmul.f32 %v2287_v20, %v2287_v20 }
 0x2a6   :  { %2288 = vtanh.f32 %v1109_v29  ;;  %v1526_v30 = vpop.permute.xlu2 %1525  ;;  %2177 = vset.pattern.permute.xlu1 %v2346_v3 }
 0x2a7   :  { %v3127_v24 = vpop.permute.xlu1 %1633  ;;  %1469 = vperm.xlu1 %2177, %v2870_v27   ;;  %v1156_v25 = vsub.f32 1.0, %v1140_v26 }
 0x2a8   :  { %v3130_v2 = vpop.permute.xlu0 %1569 }
 0x2a9   :  { %2092 = vmatmul.msk.f32.gmra.mxu1 %vm1018_vm1, %v1156_v25 }
 0x2ab   :  { %v960_v57 = vpop.f32.mrf.mxu1 }
 0x2ac   :  { %v2289_v19 = vpop.eup %2288  ;;  %v1088_v58 = vadd.f32 %v1087_v6, %v960_v57  ;;  %v963_v28 = vpop.f32.mrf.mxu3 }
 0x2ad   :  { %v1090_v15 = vadd.f32 %v1089_v5, %v963_v28  ;;  %2059 = vmatmul.msk.f32.gmra.mxu3 %vm1018_vm1, %v2289_v19  ;;  %v1141_v42 = vmul.f32 %v2289_v19, %v2289_v19 }
 0x2ae   :  { %v1110_v3 = vadd.f32 %v2931_v16, %v1088_v58 }
 0x2af   :  { %v1111_v32 = vadd.f32 %v2931_v16, %v1090_v15  ;;  %v3136_v48 = vpop.permute.xlu2 %1485  ;;  %2179 = vset.pattern.permute.xlu1 %v2348_v31  ;;  %v1157_v40 = vsub.f32 1.0, %v1141_v42 }
 0x2b0   :  { %2290 = vtanh.f32 %v1110_v3  ;;  %v3139_v38 = vpop.permute.xlu1 %1437  ;;  %1629 = vperm.xlu1 %2179, %v2870_v27  }
 0x2b1   :  { %3545 = vst [vmem:[#allocation10_spill] sm:$0xff] %v3139_v38  ;;  %2292 = vtanh.f32 %v1111_v32  ;;  %v3142_v44 = vpop.permute.xlu0 %1553  ;;  %2093 = vmatmul.msk.f32.gmra.mxu1 %vm1018_vm1, %v1157_v40 }
 0x2b3   :  { %v3145_v12 = vpop.f32.mrf.mxu1 }
 0x2b4   :  { %v3147_v51 = vpop.f32.mrf.mxu3 }
 0x2b6   :  { %v2291_v16 = vpop.eup %2290 }
 0x2b7   :  { %v2293_v6 = vpop.eup %2292  ;;  %2060 = vmatmul.msk.f32.gmra.mxu3 %vm1018_vm1, %v2291_v16  ;;  %v1142_v31 = vmul.f32 %v2291_v16, %v2291_v16 }
 0x2b8   :  { %v1143_v20 = vmul.f32 %v2293_v6, %v2293_v6  ;;  %v3150_v29 = vpop.permute.xlu2 %1565  ;;  %v3152_v26 = vpop.permute.xlu1 %1493  ;;  %1605 = vperm.xlu1 %2179, %v2803_v34  }
 0x2b9   :  { %v3155_v27 = vpop.permute.xlu0 %1517  ;;  %v1158_v57 = vsub.f32 1.0, %v1142_v31 }
 0x2ba   :  { %v1159_v19 = vsub.f32 1.0, %v1143_v20 }
 0x2bb   :  { %v3157_v58 = vpop.f32.mrf.mxu1  ;;  %2094 = vmatmul.msk.f32.gmra.mxu1 %vm1018_vm1, %v1158_v57 }
 0x2bc   :  { %2062 = vmatpush.xpose.msk.msra.mxu0 %vm1018_vm1, %v1159_v19  ;;  %v3161_v5 = vpop.f32.mrf.mxu3 }
 0x2bf   :  { %2061 = vmatmul.msk.f32.gmra.mxu3 %vm1018_vm1, %v2293_v6 }
 0x2c0   :  { %2063 = vmatpush.xpose.msk.msra.mxu0 %vm1018_vm1, %v1158_v57  ;;  %1593 = vperm.xlu1 %2179, %v2773_v56  }
 0x2c1   :  { %v1450_v28 = vpop.permute.xlu2 %1449  ;;  %v3166_v34 = vpop.permute.xlu1 %1573 }
 0x2c2   :  { %v3168_v15 = vpop.permute.xlu0 %1477 }
 0x2c3   :  { %v3170_v42 = vpop.f32.mrf.mxu1  ;;  %2095 = vmatmul.msk.f32.gmra.mxu1 %vm1018_vm1, %v1159_v19 }
 0x2c4   :  { %v3175_v3 = vmul.f32 %v3106_v21, %v3170_v42  ;;  %2064 = vmatpush.xpose.msk.msra.mxu0 %vm1018_vm1, %v1157_v40  ;;  %v3178_v32 = vpop.f32.mrf.mxu3 }
 0x2c6   :  { %3546 = vst [vmem:[#allocation11_spill] sm:$0xff] %v3175_v3 }
 0x2c8   :  { %2065 = vmatpush.xpose.msk.msra.mxu0 %vm1018_vm1, %v1156_v25 }
 0x2c9   :  { %v3181_v56 = vpop.permute.xlu1 %1557 }
 0x2ca   :  { %v1534_v16 = vpop.permute.xlu2 %1533 }
 0x2cb   :  { %v3183_v6 = vpop.permute.xlu0 %1645  ;;  %v3185_v31 = vpop.f32.mrf.mxu1 }
 0x2cc   :  { %2066 = vmatpush.xpose.msk.msra.mxu0 %vm1018_vm1, %v1155_v49  ;;  %v3194_v40 = vmul.f32 %v1526_v30, %v3185_v31  ;;  %v3196_v25 = vpop.f32.mrf.mxu3 }
 0x2d0   :  { %2067 = vmatpush.xpose.msk.msra.mxu0 %vm1018_vm1, %v1154_v17 }
 0x2d1   :  { %v1522_v21 = vpop.permute.xlu1 %1521 }
 0x2d2   :  { %v3199_v20 = vmul.f32 %v1522_v21, %v3170_v42 }
 0x2d3   :  { %v1394_v57 = vpop.f32.mrf.mxu1  ;;  %v1462_v19 = vpop.permute.xlu2 %1461 }
 0x2d4   :  { %v3203_v41 = vmul.f32 %v1450_v28, %v1394_v57  ;;  %v1454_v49 = vpop.permute.xlu0 %1453  ;;  %2068 = vmatpush.xpose.msk.msra.mxu0 %vm1018_vm1, %v1153_v43  ;;  %v3213_v30 = vpop.f32.mrf.mxu3 }
 0x2d6   :  { %3547 = vst [vmem:[#allocation12_spill] sm:$0xff] %v3203_v41 }
 0x2d8   :  { %2069 = vmatpush.xpose.msk.msra.mxu0 %vm1018_vm1, %v1152_v52 }
 0x2da   :  { %v3211_v23 = vpop.permute.xlu1 %1481 }
 0x2db   :  { %v1397_v17 = vpop.f32.mrf.mxu1 }
 0x2dc   :  { %v3215_v21 = vmul.f32 %v1454_v49, %v1397_v17  ;;  %v1622_v36 = vpop.permute.xlu2 %1621  ;;  %2070 = vmatpush.xpose.msk.msra.mxu0 %vm1018_vm1, %v1151_v50  ;;  %v3228_v43 = vpop.f32.mrf.mxu3 }
 0x2dd   :  { %v1538_v28 = vpop.permute.xlu0 %1537 }
 0x2de   :  { %3548 = vst [vmem:[#allocation13_spill] sm:$0xff] %v3215_v21 }
 0x2e0   :  { %2071 = vmatpush.xpose.msk.msra.mxu0 %vm1018_vm1, %v1150_v35 }
 0x2e3   :  { %v1400_v53 = vpop.f32.mrf.mxu1  ;;  %v3223_v62 = vpop.permute.xlu1 %1561 }
 0x2e4   :  { %2072 = vmatpush.xpose.msk.msra.mxu0 %vm1018_vm1, %v1149_v33  ;;  %v3240_v33 = vpop.f32.mrf.mxu3 }
 0x2e5   :  { %v1546_v52 = vpop.permute.xlu2 %1545 }
 0x2e6   :  { %v1466_v49 = vpop.permute.xlu0 %1465 }
 0x2e8   :  { %2073 = vmatpush.xpose.msk.msra.mxu0 %vm1018_vm1, %v1148_v37 }
 0x2eb   :  { %v1403_v46 = vpop.f32.mrf.mxu1 }
 0x2ec   :  { %v3233_v50 = vmul.f32 %v1462_v19, %v1403_v46  ;;  %v3235_v8 = vpop.permute.xlu1 %1445  ;;  %2074 = vmatpush.xpose.msk.msra.mxu0 %vm1018_vm1, %v1147_v18  ;;  %v3250_v19 = vmul.f32 %v1534_v16, %v1397_v17  ;;  %v3263_v45 = vpop.f32.mrf.mxu3 }
 0x2ed   :  { %3550 = vst [vmem:[#allocation15_spill] sm:$0xff] %v3235_v8  ;;  %v1550_v4 = vpop.permute.xlu2 %1549  ;;  %v1582_v8 = vmul.f32 %v1538_v28, %v1400_v53 }
 0x2ee   :  { %3549 = vst [vmem:[#allocation14_spill] sm:$0xff] %v3233_v50 }
 0x2ef   :  { %v1626_v35 = vpop.permute.xlu0 %1625 }
 0x2f0   :  { %2075 = vmatpush.xpose.msk.msra.mxu0 %vm1018_vm1, %v1146_v63 }
 0x2f3   :  { %v1406_v22 = vpop.f32.mrf.mxu1 }
 0x2f4   :  { %v3245_v13 = vmul.f32 %v1466_v49, %v1406_v22  ;;  %2076 = vmatpush.xpose.msk.msra.mxu0 %vm1018_vm1, %v1145_v54  ;;  %v3552_v49 = vsub.f32 1.0, %v2947_v7  ;;  %v3281_v54 = vmul.f32 %v1622_v36, %v1403_v46  ;;  %v1664_v55 = vmul.f32 %v1626_v35, %v1406_v22 }
 0x2f5   :  { %v1530_v37 = vpop.permute.xlu1 %1529 }
 0x2f6   :  { %3551 = vst [vmem:[#allocation16_spill] sm:$0xff] %v3245_v13  ;;  %v3252_v10 = vmul.f32 %v1530_v37, %v1394_v57  ;;  %v1614_v18 = vpop.permute.xlu2 %1613 }
 0x2f7   :  { %v1610_v39 = vpop.permute.xlu0 %1609  ;;  %v3254_v3 = vmul.f32 %v1614_v18, %v1397_v17  ;;  %v3269_v17 = vmul.f32 %v1546_v52, %v1406_v22  ;;  %v3277_v18 = vpop.f32.mrf.mxu3 }
 0x2f8   :  { %v3258_v63 = vmul.f32 %v1610_v39, %v1394_v57  ;;  %2077 = vmatpush.xpose.msk.msra.mxu0 %vm1018_vm1, %v3552_v49 }
 0x2fb   :  { %v1409_v16 = vpop.f32.mrf.mxu1  ;;  %2078 = vmatmul.msk.f32.vlgmr.msra.gmra.mxu0 %vm1018_vm1, %v2916_v59 }
 0x2fc   :  { %v3271_v37 = vmul.f32 %v1550_v4, %v1409_v16 }
 0x2fe   :  { %v1458_v57 = vpop.permute.xlu1 %1457 }
 0x2ff   :  { %v3275_v7 = vmul.f32 %v1458_v57, %v1400_v53  ;;  %v3287_v52 = vpop.f32.mrf.mxu3 }
 0x301   :  { %3553 = vst [vmem:[#allocation17_spill] sm:$0xff] %v3275_v7 }
 0x306   :  { %v3279_v49 = vpop.f32.mrf.mxu1 }
 0x307   :  { %3554 = vst [vmem:[#allocation18_spill] sm:$0xff] %v3279_v49  ;;  %v1618_v61 = vpop.permute.xlu1 %1617  ;;  %v1586_v57 = vmul.f32 %v3142_v44, %v3279_v49  ;;  %v1666_v39 = vmul.f32 %v3127_v24, %v3279_v49 }
 0x308   :  { %v3283_v0 = vmul.f32 %v1618_v61, %v1400_v53  ;;  %v1275_v44 = vpop.f32.mrf.mxu3 }
 0x30e   :  { %v3289_v4 = vpop.f32.mrf.mxu1 }
 0x30f   :  { %v1667_v38 = vmul.f32 %v3093_v11, %v3289_v4  ;;  %v1587_v36 = vmul.f32 %v3181_v56, %v3289_v4 }
 0x310   :  { %v1542_v61 = vpop.permute.xlu1 %1541  ;;  %v1278_v11 = vpop.f32.mrf.mxu3 }
 0x311   :  { %v2185_v41 = vpack.i.bf16 %v1666_v39, %v1667_v38  ;;  %v1583_v59 = vmul.f32 %v1542_v61, %v1403_v46  ;;  %v2180_v21 = vpack.i.bf16 %v1586_v57, %v1587_v36 }
 0x313   :  { %v2220_v7 = vpack.i.bf16 %v1582_v8, %v1583_v59  ;;  %2186 = vrot.lane.b32.xlu1 %v2185_v41, %s2352_s8  ;;  %2181 = vrot.lane.b32.xlu0 %v2180_v21, %s2353_s28 }
 0x319   :  { %v1470_v24 = vpop.permute.xlu1 %1469 }
 0x31a   :  { %v3301_v50 = vmul.f32 %v1470_v24, %v1409_v16 }
 0x322   :  { %v1630_v13 = vpop.permute.xlu1 %1629 }
 0x323   :  { %v1665_v56 = vmul.f32 %v1630_v13, %v1409_v16 }
 0x325   :  { %v2215_v49 = vpack.i.bf16 %v1664_v55, %v1665_v56  ;;  %v1176_v56 = vld [vmem:[%s3528_s4 + $0x60] sm:$0xff] }
 0x326   :  { %v3303_v28 = vpop.f32.mrf.mxu1 }
 0x327   :  { %v1588_v41 = vmul.f32 %v3223_v62, %v3303_v28  ;;  %v1668_v21 = vmul.f32 %v3115_v47, %v3303_v28  ;;  %v1179_v47 = vld [vmem:[%s3528_s4 + $0x78] sm:$0xff] }
 0x328   :  { %v1281_v38 = vpop.f32.mrf.mxu3 }
 0x32e   :  { %v3305_v53 = vpop.f32.mrf.mxu1 }
 0x32f   :  { %v1669_v46 = vmul.f32 %v3183_v6, %v3305_v53  ;;  %v1589_v8 = vmul.f32 %v3150_v29, %v3305_v53 }
 0x330   :  { %v1284_v35 = vpop.f32.mrf.mxu3 }
 0x331   :  { %v2195_v13 = vpack.i.bf16 %v1668_v21, %v1669_v46  ;;  %v2190_v55 = vpack.i.bf16 %v1588_v41, %v1589_v8  ;;  %v1175_v41 = vld [vmem:[%s3528_s4 + $0x58] sm:$0xff]  ;;  %v1282_v21 = vadd.f32 %v1281_v38, %v1176_v56  ;;  %v1174_v46 = vld [vmem:[%s3528_s4 + $0x50] sm:$0xff]  ;;  %v1172_v38 = vld [vmem:[%s3528_s4 + $0x40] sm:$0xff] }
 0x332   :  { %v1279_v8 = vadd.f32 %v1278_v11, %v1175_v41 }
 0x333   :  { %2196 = vrot.lane.b32.xlu2 %v2195_v13, %s2352_s8  ;;  %2191 = vrot.lane.b32.xlu1 %v2190_v55, %s2353_s28  ;;  %v3556_v13 = vpack.i.bf16 %v3269_v17, %v3271_v37  ;;  %v1171_v55 = vld [vmem:[%s3528_s4 + $0x38] sm:$0xff]  ;;  %v1169_v17 = vld [vmem:[%s3528_s4 + $0x28] sm:$0xff] }
 0x338   :  { %v3317_v22 = vpop.f32.mrf.mxu1 }
 0x339   :  { %v1590_v29 = vmul.f32 %v3130_v2, %v3317_v22  ;;  %v1670_v6 = vmul.f32 %v3119_v60, %v3317_v22  ;;  %v3555_v2 = vpack.i.bf16 %v3258_v63, %v3254_v3  ;;  %v1577_v60 = vmul.f32 %v3155_v27, %v3157_v58 }
 0x33a   :  { %v1287_v16 = vpop.f32.mrf.mxu3  ;;  %v1576_v3 = vmul.f32 %v3052_v14, %v3145_v12  ;;  %v1173_v14 = vld [vmem:[%s3528_s4 + $0x48] sm:$0xff] }
 0x33b   :  { %2221 = vrot.lane.b32.xlu1 %v2220_v7, %s2353_s28  ;;  %v1178_v7 = vld [vmem:[%s3528_s4 + $0x70] sm:$0xff]  ;;  %v1273_v11 = vadd.f32 %v3287_v52, %v1173_v14  ;;  %v1168_v52 = vld [vmem:[%s3528_s4 + $0x20] sm:$0xff] }
 0x33c   :  { %v2250_v27 = vpack.i.bf16 %v1576_v3, %v1577_v60  ;;  %v1509_v3 = vmul.f32 %v3136_v48, %v3305_v53  ;;  %v3438_v48 = vld [vmem:[%s3526_s2] ss:$0 sm:$0xff]  ;;  %s2355_s2 = smov [#allocation2]  }
 0x340   :  { %v3320_v62 = vpop.f32.mrf.mxu1 }
 0x341   :  { %v1671_v39 = vmul.f32 %v3079_v9, %v3320_v62  ;;  %v1591_v59 = vmul.f32 %v3166_v34, %v3320_v62  ;;  %v1177_v9 = vld [vmem:[%s3528_s4 + $0x68] sm:$0xff]  ;;  %v1288_v34 = vadd.f32 %v1287_v16, %v1178_v7  ;;  %v1267_v16 = vadd.f32 %v3263_v45, %v1171_v55 }
 0x342   :  { %v1290_v57 = vpop.f32.mrf.mxu3  ;;  %v1285_v63 = vadd.f32 %v1284_v35, %v1177_v9  ;;  %v1276_v35 = vadd.f32 %v1275_v44, %v1174_v46  ;;  %v1270_v44 = vadd.f32 %v3277_v18, %v1172_v38  ;;  %v3557_v18 = vpack.i.bf16 %v3252_v10, %v3250_v19  ;;  %v1167_v19 = vld [vmem:[%s3528_s4 + $0x18] sm:$0xff] }
 0x343   :  { %v2210_v36 = vpack.i.bf16 %v1670_v6, %v1671_v39  ;;  %v2200_v61 = vpack.i.bf16 %v1590_v29, %v1591_v59  ;;  %v1291_v24 = vadd.f32 %v1290_v57, %v1179_v47  ;;  %2236 = vrot.lane.b32.xlu1 %v3555_v2, %s2352_s8  ;;  %v1606_v47 = vpop.permute.xlu1 %1605  ;;  %v1602_v29 = vpop.permute.xlu2 %1601  ;;  %v3558_v45 = vpack.i.bf16 %v3283_v0, %v3281_v54  ;;  %v1166_v59 = vld [vmem:[%s3528_s4 + $0x10] sm:$0xff] }
 0x344   :  { %v1261_v6 = vadd.f32 %v3228_v43, %v1169_v17  ;;  %v1258_v10 = vadd.f32 %v3213_v30, %v1168_v52  ;;  %v1658_v39 = vmul.f32 %v1602_v29, %v3170_v42  ;;  %v1255_v0 = vadd.f32 %v3196_v25, %v1167_v19  ;;  %v1165_v43 = vld [vmem:[%s3528_s4 + $0x8] sm:$0xff]  ;;  %v1164_v42 = vld [vmem:[%s3528_s4] sm:$0xff] }
 0x345   :  { %1834 = vmatpush.msra.mxu2 %v1291_v24  ;;  %2211 = vrot.lane.b32.xlu0 %v2210_v36, %s2352_s8  ;;  %v1252_v7 = vadd.f32 %v3178_v32, %v1166_v59  ;;  %v3559_v25 = vpack.i.bf16 %v3199_v20, %v3194_v40  ;;  %v1249_v30 = vadd.f32 %v3161_v5, %v1165_v43  ;;  %v1598_v36 = vpop.permute.xlu0 %1597 }
 0x346   :  { %2201 = vrot.lane.b32.xlu2 %v2200_v61, %s2353_s28  ;;  %v1246_v32 = vadd.f32 %v3147_v51, %v1164_v42  ;;  %v1657_v24 = vmul.f32 %v1598_v36, %v3157_v58  ;;  %v1511_v51 = vmul.f32 %v3152_v26, %v3320_v62  ;;  %v1508_v62 = vmul.f32 %v3211_v23, %v3303_v28 }
 0x347   :  { %1835 = vmatpush.msra.mxu2 %v1288_v34  ;;  %v3561_v28 = vmov 0.0   ;;  %v1507_v17 = vmul.f32 %v3168_v15, %v3289_v4 }
 0x348   :  { %154 = vst.msk [vmem:[#allocation4] sm:$0x3] %vm153_vm7, %v3561_v28 }
 0x349   :  { %1836 = vmatpush.msra.mxu2 %v1285_v63  ;;  %152 = vst.msk [vmem:[%s3535_s11] sm:$0x3] %vm151_vm8, %v3561_v28 }
 0x34b   :  { %1837 = vmatpush.msra.mxu2 %v1282_v21  ;;  %2251 = vrot.lane.b32.xlu1 %v2250_v27, %s2353_s28  ;;  %v1594_v57 = vpop.permute.xlu1 %1593  ;;  %v1510_v21 = vmul.f32 %v3121_v1, %v3317_v22 }
 0x34c   :  { %v1656_v61 = vmul.f32 %v1594_v57, %v3145_v12 }
 0x34d   :  { %1838 = vmatpush.msra.mxu2 %v1279_v8  ;;  %2216 = vrot.lane.b32.xlu0 %v2215_v49, %s2352_s8  ;;  %v1170_v49 = vld [vmem:[%s3528_s4 + $0x30] sm:$0xff] }
 0x34e   :  { %2206 = vrot.lane.b32.xlu2 %v3556_v13, %s2353_s28  ;;  %v1264_v37 = vadd.f32 %v3240_v33, %v1170_v49  ;;  %v1659_v33 = vmul.f32 %v1606_v47, %v3185_v31  ;;  %v2255_v2 = vpack.i.bf16 %v1656_v61, %v1657_v24  ;;  %v2354_v49 = vmov 1.0  }
 0x34f   :  { %1839 = vmatpush.msra.mxu2 %v1276_v35  ;;  %v3560_v35 = vlaneseq }
 0x350   :  { %v2245_v54 = vpack.i.bf16 %v1658_v39, %v1659_v33  ;;  %v3563_v33 = vld [vmem:[#allocation8_spill] sm:$0xff] }
 0x351   :  { %1840 = vmatpush.msra.mxu2 %v1273_v11  ;;  %v3433_v38 = vshrl.u32 %v3560_v35, 7 }
 0x353   :  { %1841 = vmatpush.msra.mxu2 %v1270_v44  ;;  %vm273_vm6 = vcmp.eq.s32.totalorder %v3433_v38, %v3438_v48 }
 0x355   :  { %1842 = vmatpush.msra.mxu2 %v1267_v16  ;;  %2231 = vrot.lane.b32.xlu0 %v3557_v18, %s2353_s28 }
 0x356   :  { %2226 = vrot.lane.b32.xlu2 %v3558_v45, %s2352_s8 }
 0x357   :  { %1843 = vmatpush.msra.mxu2 %v1264_v37 }
 0x359   :  { %1844 = vmatpush.msra.mxu2 %v1261_v6  ;;  %v3562_v6 = vld [vmem:[#allocation18_spill] sm:$0xff] }
 0x35a   :  { %v1506_v19 = vmul.f32 %v3563_v33, %v3562_v6 }
 0x35b   :  { %1845 = vmatpush.msra.mxu2 %v1258_v10 }
 0x35d   :  { %1846 = vmatpush.msra.mxu2 %v1255_v0  ;;  %2246 = vrot.lane.b32.xlu0 %v2245_v54, %s2352_s8 }
 0x35e   :  { %2241 = vrot.lane.b32.xlu2 %v3559_v25, %s2353_s28  ;;  %s1891_s28 = sshll.u32 %s2355_s2, 4  ;;  %s1892_s28 = int_to_ptr.vmem [resolvable:$true] %s1891_s28 }
 0x35f   :  { %1847 = vmatpush.msra.mxu2 %v1252_v7 }
 0x361   :  { %1848 = vmatpush.msra.mxu2 %v1249_v30 }
 0x363   :  { %1849 = vmatpush.msra.mxu2 %v1246_v32 }
 0x364   :  { %2096 = vmatmul.msk.f32.vlgmr.msra.gmra.mxu2 %vm273_vm6, %v2354_v49 }
 0x366   :  { %2256 = vrot.lane.b32.xlu2 %v2255_v2, %s2352_s8 }
 0x378   :  { %v1362_v22 = vpop.f32.mrf.mxu0 }
 0x379   :  { %v1430_v23 = vsub.f32 0.0, %v1362_v22  ;;  %v3569_v22 = vld [vmem:[#allocation15_spill] sm:$0xff] }
 0x37b   :  { %1431 = vst [vmem:[#allocation2] sm:$0x7] %v1430_v23 }
 0x37c   :  { %1896 = dma.vmem_to_hbm [thread:$0]  %s1892_s28, 64, %s1894_s5, [#allocation3]  }
 0x385   :  { %v2187_v60 = vpop.permute.xlu1 %2186  ;;  %v2182_v20 = vpop.permute.xlu0 %2181 }
 0x386   :  { %v2183_v13 = vunpack.i.l.bf16 %v2182_v20  ;;  %v2184_v37 = vunpack.i.h.bf16 %v2182_v20  ;;  %v2188_v52 = vunpack.i.l.bf16 %v2187_v60  ;;  %v2189_v59 = vunpack.i.h.bf16 %v2187_v60  ;;  %v3564_v60 = vld [vmem:[#allocation16_spill] sm:$0xff] }
 0x388   :  { %v1811_v39 = vsel %vm848_vm4, %v1507_v17, %v2183_v13  ;;  %v1810_v4 = vsel %vm848_vm4, %v1506_v19, %v2184_v37  ;;  %v1499_v13 = vmul.f32 %v3569_v22, %v3185_v31  ;;  %v3570_v37 = vld [vmem:[#allocation10_spill] sm:$0xff]  ;;  %v3571_v31 = vld [vmem:[#allocation9_spill] sm:$0xff]  ;;  %v3572_v19 = vld [vmem:[#allocation11_spill] sm:$0xff] }
 0x389   :  { %v1828_v7 = vsel %vm1816_vm5, %v1811_v39, %v2188_v52  ;;  %v1827_v30 = vsel %vm1816_vm5, %v1810_v4, %v2189_v59  ;;  %v1496_v33 = vmul.f32 %v3571_v31, %v3145_v12  ;;  %v1833_v12 = vld [vmem:[%s3535_s11] sm:$0x3] }
 0x38d   :  { %v2197_v9 = vpop.permute.xlu2 %2196 }
 0x38e   :  { %v2198_v16 = vunpack.i.l.bf16 %v2197_v9  ;;  %v2199_v29 = vunpack.i.h.bf16 %v2197_v9 }
 0x3a0   :  { %v2202_v34 = vpop.permute.xlu2 %2201 }
 0x3a1   :  { %v2203_v5 = vunpack.i.l.bf16 %v2202_v34  ;;  %v2204_v63 = vunpack.i.h.bf16 %v2202_v34 }
 0x3a3   :  { %v1815_v26 = vsel %vm848_vm4, %v1511_v51, %v2203_v5  ;;  %v1814_v55 = vsel %vm848_vm4, %v1510_v21, %v2204_v63  ;;  %v3566_v63 = vld [vmem:[#allocation17_spill] sm:$0xff] }
 0x3a5   :  { %v2192_v40 = vpop.permute.xlu1 %2191 }
 0x3a6   :  { %v2193_v41 = vunpack.i.l.bf16 %v2192_v40  ;;  %v2194_v53 = vunpack.i.h.bf16 %v2192_v40  ;;  %v3565_v40 = vld [vmem:[#allocation14_spill] sm:$0xff] }
 0x3a8   :  { %v3422_v56 = vpop.permute.xlu2 %2206  ;;  %v1813_v44 = vsel %vm848_vm4, %v1509_v3, %v2193_v41  ;;  %v1812_v18 = vsel %vm848_vm4, %v1508_v62, %v2194_v53  ;;  %v3568_v53 = vld [vmem:[#allocation12_spill] sm:$0xff] }
 0x3a9   :  { %v1830_v45 = vsel %vm1816_vm5, %v1813_v44, %v2198_v16  ;;  %v1829_v0 = vsel %vm1816_vm5, %v1812_v18, %v2199_v29  ;;  %v2208_v15 = vunpack.i.l.bf16 %v3422_v56  ;;  %v2209_v57 = vunpack.i.h.bf16 %v3422_v56 }
 0x3aa   :  { %v1497_v18 = vmul.f32 %v3570_v37, %v3157_v58 }
 0x3ab   :  { %v1809_v32 = vsel %vm848_vm4, %v3301_v50, %v2208_v15  ;;  %v1808_v34 = vsel %vm848_vm4, %v3564_v60, %v2209_v57 }
 0x3ad   :  { %v3430_v46 = vpop.permute.xlu1 %2221 }
 0x3ae   :  { %v2223_v42 = vunpack.i.l.bf16 %v3430_v46  ;;  %v2224_v36 = vunpack.i.h.bf16 %v3430_v46 }
 0x3b0   :  { %v2227_v11 = vpop.permute.xlu2 %2226  ;;  %v1807_v20 = vsel %vm848_vm4, %v3565_v40, %v2223_v42  ;;  %v1806_v50 = vsel %vm848_vm4, %v3566_v63, %v2224_v36 }
 0x3b1   :  { %v2228_v24 = vunpack.i.l.bf16 %v2227_v11  ;;  %v2229_v56 = vunpack.i.h.bf16 %v2227_v11 }
 0x3b3   :  { %v1824_v41 = vsel %vm1816_vm5, %v1807_v20, %v2228_v24 }
 0x3b5   :  { %v2237_v54 = vpop.permute.xlu1 %2236 }
 0x3b6   :  { %v2238_v46 = vunpack.i.l.bf16 %v2237_v54  ;;  %v2239_v62 = vunpack.i.h.bf16 %v2237_v54 }
 0x3b7   :  { %v2212_v27 = vpop.permute.xlu0 %2211 }
 0x3b8   :  { %v2214_v8 = vunpack.i.h.bf16 %v2212_v27  ;;  %v2213_v14 = vunpack.i.l.bf16 %v2212_v27  ;;  %v2242_v61 = vpop.permute.xlu2 %2241  ;;  %v3567_v27 = vld [vmem:[#allocation13_spill] sm:$0xff] }
 0x3b9   :  { %v2243_v35 = vunpack.i.l.bf16 %v2242_v61  ;;  %v2244_v11 = vunpack.i.h.bf16 %v2242_v61 }
 0x3ba   :  { %v1832_v1 = vsel %vm1816_vm5, %v1815_v26, %v2213_v14  ;;  %v1831_v47 = vsel %vm1816_vm5, %v1814_v55, %v2214_v8  ;;  %v1823_v14 = vsel %vm1816_vm5, %v1806_v50, %v2229_v56 }
 0x3bb   :  { %1858 = vmatpush.msrb.mxu3 %v1832_v1  ;;  %v1803_v29 = vsel %vm848_vm4, %v1499_v13, %v2243_v35 }
 0x3bd   :  { %1859 = vmatpush.msrb.mxu3 %v1831_v47  ;;  %v2252_v8 = vpop.permute.xlu1 %2251 }
 0x3be   :  { %v2253_v55 = vunpack.i.l.bf16 %v2252_v8  ;;  %v2254_v52 = vunpack.i.h.bf16 %v2252_v8 }
 0x3bf   :  { %v2217_v10 = vpop.permute.xlu0 %2216  ;;  %1860 = vmatpush.msrb.mxu3 %v1830_v45 }
 0x3c0   :  { %v2218_v43 = vunpack.i.l.bf16 %v2217_v10  ;;  %v2219_v25 = vunpack.i.h.bf16 %v2217_v10  ;;  %v2257_v44 = vpop.permute.xlu2 %2256  ;;  %v1802_v10 = vsel %vm848_vm4, %v3572_v19, %v2244_v11  ;;  %v1801_v39 = vsel %vm848_vm4, %v1497_v18, %v2253_v55 }
 0x3c1   :  { %1861 = vmatpush.msrb.mxu3 %v1829_v0  ;;  %v2258_v45 = vunpack.i.l.bf16 %v2257_v44  ;;  %v2259_v59 = vunpack.i.h.bf16 %v2257_v44  ;;  %v1800_v58 = vsel %vm848_vm4, %v1496_v33, %v2254_v52 }
 0x3c2   :  { %v1826_v2 = vsel %vm1816_vm5, %v1809_v32, %v2218_v43  ;;  %v1825_v3 = vsel %vm1816_vm5, %v1808_v34, %v2219_v25 }
 0x3c3   :  { %1862 = vmatpush.msrb.mxu3 %v1828_v7  ;;  %v1818_v15 = vsel %vm1816_vm5, %v1801_v39, %v2258_v45  ;;  %v1817_v4 = vsel %vm1816_vm5, %v1800_v58, %v2259_v59 }
 0x3c5   :  { %1863 = vmatpush.msrb.mxu3 %v1827_v30 }
 0x3c7   :  { %v2232_v9 = vpop.permute.xlu0 %2231  ;;  %1864 = vmatpush.msrb.mxu3 %v1826_v2 }
 0x3c8   :  { %v2233_v5 = vunpack.i.l.bf16 %v2232_v9  ;;  %v2234_v51 = vunpack.i.h.bf16 %v2232_v9 }
 0x3c9   :  { %1865 = vmatpush.msrb.mxu3 %v1825_v3 }
 0x3ca   :  { %v1805_v21 = vsel %vm848_vm4, %v3567_v27, %v2233_v5  ;;  %v1804_v26 = vsel %vm848_vm4, %v3568_v53, %v2234_v51 }
 0x3cb   :  { %1866 = vmatpush.msrb.mxu3 %v1824_v41  ;;  %v1822_v1 = vsel %vm1816_vm5, %v1805_v21, %v2238_v46  ;;  %v1821_v17 = vsel %vm1816_vm5, %v1804_v26, %v2239_v62 }
 0x3cd   :  { %1867 = vmatpush.msrb.mxu3 %v1823_v14 }
 0x3cf   :  { %v2247_v23 = vpop.permute.xlu0 %2246  ;;  %1868 = vmatpush.msrb.mxu3 %v1822_v1 }
 0x3d0   :  { %v2249_v16 = vunpack.i.h.bf16 %v2247_v23  ;;  %v2248_v47 = vunpack.i.l.bf16 %v2247_v23 }
 0x3d1   :  { %1869 = vmatpush.msrb.mxu3 %v1821_v17 }
 0x3d2   :  { %v1820_v6 = vsel %vm1816_vm5, %v1803_v29, %v2248_v47  ;;  %v1819_v0 = vsel %vm1816_vm5, %v1802_v10, %v2249_v16 }
 0x3d3   :  { %1870 = vmatpush.msrb.mxu3 %v1820_v6 }
 0x3d5   :  { %1871 = vmatpush.msrb.mxu3 %v1819_v0 }
 0x3d7   :  { %1872 = vmatpush.msrb.mxu3 %v1818_v15 }
 0x3d9   :  { %1873 = vmatpush.msrb.mxu3 %v1817_v4 }
 0x3da   :  { %2097 = vmatmul.msk.f32.vlgmr.msrb.gmra.mxu3 %vm273_vm6, %v2354_v49  ;;  %v1857_v49 = vld [vmem:[#allocation4] sm:$0x3] }
 0x3e7   :  { %v1851_v38 = vpop.f32.mrf.mxu2 }
 0x3e8   :  { %v1854_v48 = vadd.f32 %v1851_v38, %v1833_v12 }
 0x3ea   :  { %1856 = vst.msk [vmem:[%s3535_s11] sm:$0x3] %vm151_vm8, %v1854_v48 }
 0x45d   :  { %v1875_v54 = vpop.f32.mrf.mxu3 }
 0x45e   :  { %v1878_v43 = vadd.f32 %v1875_v54, %v1857_v49 }
 0x460   :  { %1880 = vst.msk [vmem:[#allocation4] sm:$0x3] %vm153_vm7, %v1878_v43 }
 0x461   :  { %1907 = dma.vmem_to_hbm [thread:$0]  %s1903_s25, 32, %s1905_s27, [#allocation5]  }
 0x462   :  { %2342 = dma.done.wait [#allocation3], 64  }
 0x463   :  { %2343 = vsyncadd [#allocation3], 4294967232 }
 0x464   :  { %2344 = dma.done.wait [#allocation5], 32  }
 0x465   :  { %2345 = vsyncadd [#allocation5], 4294967264 }
 0x466   :  { %1918 = vsyncpa [#allocation3], 1 }
 0x467   :  { %1919 = vsyncpa [#allocation5], 1 }

</bundles_post_ra>
